<compile_context>
chip_gen: v5e
topology: v5e:2x2
jax: 0.10.0
libtpu: 0.0.40
codegen_flags: <defaults>
</compile_context>

<pallas_src>
import functools

import jax
import jax.numpy as jnp
from jax.experimental import pallas as pl
from jax.experimental.pallas import tpu as pltpu


def _round_up(x, m):
    return ((x + m - 1) // m) * m


def _cdiv(a, b):
    return (a + b - 1) // b


def _vmem_capacity_bytes():
    try:
        return int(pltpu.get_tpu_info().vmem_capacity_bytes)
    except Exception:
        return 64 << 20   # conservative default (v7x-class)


# --------------------------------------------------------------------------
# Kernel: one batch tile of GRUCell + Linear
# --------------------------------------------------------------------------
def _gru_fc_kernel(x_ref, h_ref, wih_ref, whh_ref, bih_ref, bhh_ref,
                   wfc_ref, bfc_ref, out_ref, hnew_ref, *, hp):
    """hp = lane-aligned (multiple of 128) hidden width; gate g of the fused
    input/hidden weights occupies lanes [g*hp, (g+1)*hp), so the slices below
    land exactly on vreg lane-tile boundaries."""
    x = x_ref[...]                                # (TB, Ip)  compute dtype
    h = h_ref[...].astype(jnp.float32)            # (TB, Hp)  f32 carried state

    # Fused gate pre-activations on the MXU, f32 accumulation.
    gi = jnp.dot(x, wih_ref[...], preferred_element_type=jnp.float32) + bih_ref[...]
    gh = jnp.dot(h.astype(whh_ref.dtype), whh_ref[...],
                 preferred_element_type=jnp.float32) + bhh_ref[...]

    i_r, i_z, i_n = gi[:, 0:hp], gi[:, hp:2 * hp], gi[:, 2 * hp:3 * hp]
    h_r, h_z, h_n = gh[:, 0:hp], gh[:, hp:2 * hp], gh[:, 2 * hp:3 * hp]

    # Elementwise gate math in f32 (VPU + EUP). PyTorch GRUCell semantics:
    # b_hh is folded into gh BEFORE the r * h_n product.
    r = jax.nn.sigmoid(i_r + h_r)
    z = jax.nn.sigmoid(i_z + h_z)
    n = jnp.tanh(i_n + r * h_n)
    h_new = (1.0 - z) * n + z * h                  # (TB, Hp) f32

    hnew_ref[...] = h_new.astype(hnew_ref.dtype)

    # fc: out = h_new @ W_fc^T + b_fc   (output_nonlinearity is None)
    out = jnp.dot(h_new.astype(wfc_ref.dtype), wfc_ref[...],
                  preferred_element_type=jnp.float32) + bfc_ref[...]
    out_ref[...] = out.astype(out_ref.dtype)


# --------------------------------------------------------------------------
# Parameter packing: lane-align input/gates/output, cast matmul weights
# --------------------------------------------------------------------------
def pack_params(params, compute_dtype=jnp.bfloat16):
    """Pads the input dim and each gate to 128-multiple lane blocks, pads the
    fc output dim to a 128 multiple, and casts matmul weights to
    `compute_dtype`.  Biases stay f32 (added to the f32 accumulators)."""
    input_dim = params["w_ih"].shape[0]
    hidden_dim = params["w_hh"].shape[0]
    output_dim = params["w_fc"].shape[1]
    ip = _round_up(input_dim, 128)
    hp = _round_up(hidden_dim, 128)
    op = _round_up(output_dim, 128)

    def pack_gate_cols(w, rows_out):
        # (rows_in, 3*H) -> (rows_out, 3*Hp); gate g at cols [g*hp, g*hp+H).
        rows_in = w.shape[0]
        out = jnp.zeros((rows_out, 3 * hp), jnp.float32)
        for g in range(3):
            out = out.at[:rows_in, g * hp:g * hp + hidden_dim].set(
                w[:, g * hidden_dim:(g + 1) * hidden_dim].astype(jnp.float32))
        return out

    w_ih = pack_gate_cols(params["w_ih"], ip)            # (Ip, 3*Hp)
    w_hh = pack_gate_cols(params["w_hh"], hp)            # (Hp, 3*Hp)
    b_ih = pack_gate_cols(params["b_ih"], 1)             # (1, 3*Hp)
    b_hh = pack_gate_cols(params["b_hh"], 1)             # (1, 3*Hp)

    w_fc = jnp.zeros((hp, op), jnp.float32)
    w_fc = w_fc.at[:hidden_dim, :output_dim].set(params["w_fc"].astype(jnp.float32))
    b_fc = jnp.zeros((1, op), jnp.float32)
    b_fc = b_fc.at[:, :output_dim].set(params["b_fc"].astype(jnp.float32))

    return {
        "w_ih": w_ih.astype(compute_dtype),
        "w_hh": w_hh.astype(compute_dtype),
        "b_ih": b_ih,
        "b_hh": b_hh,
        "w_fc": w_fc.astype(compute_dtype),
        "b_fc": b_fc,
        "dims": (input_dim, hidden_dim, output_dim, ip, hp, op),
        "compute_dtype": compute_dtype,
    }


# --------------------------------------------------------------------------
# Plain-XLA fallback (resident weights would not fit VMEM)
# --------------------------------------------------------------------------
def _fallback_forward(x, h, packed, out_dtype):
    input_dim, hidden_dim, output_dim, ip, hp, op = packed["dims"]
    batch = x.shape[0]
    w_ih = packed["w_ih"][:input_dim].astype(jnp.float32)
    w_hh = packed["w_hh"].astype(jnp.float32)
    w_fc = packed["w_fc"].astype(jnp.float32)
    b_ih, b_hh, b_fc = packed["b_ih"], packed["b_hh"], packed["b_fc"]
    hf = jnp.zeros((batch, hp), jnp.float32)
    if h is not None:
        hf = hf.at[:, :hidden_dim].set(h.astype(jnp.float32))
    gi = x.astype(jnp.float32) @ w_ih + b_ih
    gh = hf @ w_hh + b_hh
    r = jax.nn.sigmoid(gi[:, :hp] + gh[:, :hp])
    z = jax.nn.sigmoid(gi[:, hp:2 * hp] + gh[:, hp:2 * hp])
    n = jnp.tanh(gi[:, 2 * hp:] + r * gh[:, 2 * hp:])
    h_new = (1.0 - z) * n + z * hf
    out = h_new @ w_fc + b_fc
    return (out[:, :output_dim].astype(out_dtype),
            h_new[:, :hidden_dim].astype(out_dtype))


# --------------------------------------------------------------------------
# Wrapper
# --------------------------------------------------------------------------
def gru_network_forward(x, h, packed, *, block_batch=None, out_dtype=None):
    """Runs GRUCell + Linear in one Pallas kernel. Returns (out, h_new)."""
    input_dim, hidden_dim, output_dim, ip, hp, op = packed["dims"]
    cdt = packed["compute_dtype"]
    batch = x.shape[0]
    if out_dtype is None:
        out_dtype = x.dtype
    itemsize = jnp.dtype(cdt).itemsize
    out_itemsize = jnp.dtype(out_dtype).itemsize

    # --- per-generation VMEM budget / core split (heuristic: <=64 MiB => v7x) ---
    cap = _vmem_capacity_bytes()
    if cap <= (64 << 20):
        vmem_clamp = min(int(cap * 7 // 8), 56 << 20)      # leave compiler headroom
        num_cores = 2                                      # 2 TCs/chip on v7x
    else:
        vmem_clamp = min(cap - (24 << 20), 100 << 20)      # 128 MiB parts (v5e/v6e)
        num_cores = 1
    if block_batch is None:
        block_batch = 256 if cap <= (64 << 20) else 512

    # --- batch tile: MXU/sublane aligned, >= num_cores tiles when batch allows ---
    row_align = 16 if itemsize == 2 else 8                 # bf16 packs 2 rows/sublane
    if block_batch >= 256:
        block_batch = _round_up(block_batch, 256)
    per_core = _cdiv(batch, num_cores)
    tb = min(block_batch, _round_up(per_core, row_align))
    if tb >= 256:
        tb = _round_up(tb, 256)                            # full 256x256 MXU fill

    # --- VMEM accounting (weights single-buffered via pl.Buffered(1)) ---
    weight_bytes = ((ip * 3 * hp + hp * 3 * hp + hp * op) * itemsize
                    + (2 * 3 * hp + op) * 4)

    def act_bytes(tb_):
        # x (cdt) + h (f32) inputs, out + h_new outputs, per tile.
        return tb_ * (ip * itemsize + hp * 4 + (hp + op) * out_itemsize)

    margin = 4 << 20
    if weight_bytes + 2 * act_bytes(row_align) + margin > vmem_clamp:
        # TODO(synk): add an N-tiled path (second "arbitrary" grid axis over the
        # fused 3*Hp / op lane dims) so huge hidden sizes fit v7x's 64 MiB VMEM;
        # fall back to plain XLA for now.
        return _fallback_forward(x, h, packed, out_dtype)

    while tb > row_align and weight_bytes + 2 * act_bytes(tb) + margin > vmem_clamp:
        tb = max(row_align, _round_up(tb // 2, row_align))

    pb = _round_up(batch, tb)
    num_tiles = pb // tb

    # --- pad activations only when needed (skip copies in the aligned case) ---
    if pb == batch and ip == input_dim and x.dtype == cdt:
        xp = x
    else:
        xp = jnp.zeros((pb, ip), cdt).at[:batch, :input_dim].set(x.astype(cdt))
    if h is None:
        hpad = jnp.zeros((pb, hp), jnp.float32)
    elif pb == batch and hp == hidden_dim and h.dtype == jnp.float32:
        hpad = h
    else:
        hpad = jnp.zeros((pb, hp), jnp.float32).at[:batch, :hidden_dim].set(
            h.astype(jnp.float32))

    kernel = functools.partial(_gru_fc_kernel, hp=hp)

    def run(weight_mode, wbuf):
        def wspec(rows, cols):
            # Grid-invariant weights: loaded once, stay VMEM-resident.
            if weight_mode is None:
                return pl.BlockSpec((rows, cols), lambda b: (0, 0))
            return pl.BlockSpec((rows, cols), lambda b: (0, 0),
                                pipeline_mode=weight_mode)

        vmem_limit = int(min(max(wbuf * weight_bytes + 2 * act_bytes(tb) + margin,
                                 16 << 20), vmem_clamp))
        return pl.pallas_call(
            kernel,
            grid=(num_tiles,),
            in_specs=[
                pl.BlockSpec((tb, ip), lambda b: (b, 0)),   # x   (batch-tiled)
                pl.BlockSpec((tb, hp), lambda b: (b, 0)),   # h   (batch-tiled, f32)
                wspec(ip, 3 * hp),                          # w_ih
                wspec(hp, 3 * hp),                          # w_hh
                wspec(1, 3 * hp),                           # b_ih
                wspec(1, 3 * hp),                           # b_hh
                wspec(hp, op),                              # w_fc
                wspec(1, op),                               # b_fc
            ],
            out_specs=(
                pl.BlockSpec((tb, op), lambda b: (b, 0)),
                pl.BlockSpec((tb, hp), lambda b: (b, 0)),
            ),
            out_shape=(
                jax.ShapeDtypeStruct((pb, op), out_dtype),
                jax.ShapeDtypeStruct((pb, hp), out_dtype),
            ),
            compiler_params=pltpu.CompilerParams(
                dimension_semantics=("parallel",),
                vmem_limit_bytes=vmem_limit,
            ),
        )(xp, hpad, packed["w_ih"], packed["w_hh"], packed["b_ih"],
          packed["b_hh"], packed["w_fc"], packed["b_fc"])

    try:
        # Preferred: weights loaded once, single-buffered (halves weight VMEM).
        out_p, hnew_p = run(pl.Buffered(1), 1)
    except Exception:
        # Older JAX / unsupported pipeline_mode: default double-buffering.
        out_p, hnew_p = run(None, 2)

    # Slice the lane/row padding back off.
    return out_p[:batch, :output_dim], hnew_p[:batch, :hidden_dim]


# --------------------------------------------------------------------------
# Parameter init (PyTorch GRUCell / Linear shapes, stored pre-transposed)
# --------------------------------------------------------------------------
def init_params(key, input_dim, hidden_dim, output_dim, dtype=jnp.float32):
    k = jax.random.split(key, 6)
    s_gru = 1.0 / jnp.sqrt(hidden_dim)
    s_fc = 1.0 / jnp.sqrt(hidden_dim)
    return {
        # PyTorch: weight_ih (3H, I) -> transposed (I, 3H), gate order r,z,n
        "w_ih": jax.random.uniform(k[0], (input_dim, 3 * hidden_dim), dtype, -s_gru, s_gru),
        "w_hh": jax.random.uniform(k[1], (hidden_dim, 3 * hidden_dim), dtype, -s_gru, s_gru),
        "b_ih": jax.random.uniform(k[2], (1, 3 * hidden_dim), dtype, -s_gru, s_gru),
        "b_hh": jax.random.uniform(k[3], (1, 3 * hidden_dim), dtype, -s_gru, s_gru),
        # PyTorch: fc.weight (O, H) -> transposed (H, O)
        "w_fc": jax.random.uniform(k[4], (hidden_dim, output_dim), dtype, -s_fc, s_fc),
        "b_fc": jax.random.uniform(k[5], (1, output_dim), dtype, -s_fc, s_fc),
    }


def _reference(x, h, params):
    """Pure-JAX f32 reference of the same forward pass."""
    H = params["w_hh"].shape[0]
    if h is None:
        h = jnp.zeros((x.shape[0], H), x.dtype)
    gi = x @ params["w_ih"] + params["b_ih"]
    gh = h @ params["w_hh"] + params["b_hh"]
    r = jax.nn.sigmoid(gi[:, :H] + gh[:, :H])
    z = jax.nn.sigmoid(gi[:, H:2 * H] + gh[:, H:2 * H])
    n = jnp.tanh(gi[:, 2 * H:] + r * gh[:, 2 * H:])
    h_new = (1.0 - z) * n + z * h
    out = h_new @ params["w_fc"] + params["b_fc"]
    return out, h_new


if __name__ == "__main__":
    batch, input_dim, hidden_dim, output_dim = 2, 16, 32, 8

    key = jax.random.PRNGKey(0)
    k_x, k_h, k_p = jax.random.split(key, 3)

    x = jax.random.normal(k_x, (batch, input_dim), jnp.float32)
    h0 = jax.random.normal(k_h, (batch, hidden_dim), jnp.float32)
    params = init_params(k_p, input_dim, hidden_dim, output_dim)

    ref_out, ref_h = _reference(x, h0, params)
    ref_out0, ref_h0 = _reference(x, None, params)

    # f32 matmul path: tight correctness check vs the pure-JAX reference.
    packed_f32 = pack_params(params, compute_dtype=jnp.float32)
    out, h_new = gru_network_forward(x, h0, packed_f32)
    jax.block_until_ready((out, h_new))
    assert out.shape == (batch, output_dim) and h_new.shape == (batch, hidden_dim)
    assert jnp.allclose(out, ref_out, atol=1e-5, rtol=1e-5)
    assert jnp.allclose(h_new, ref_h, atol=1e-5, rtol=1e-5)

    # h=None path (zero initial hidden state).
    out0, h_new0 = gru_network_forward(x, None, packed_f32)
    jax.block_until_ready((out0, h_new0))
    assert jnp.allclose(out0, ref_out0, atol=1e-5, rtol=1e-5)
    assert jnp.allclose(h_new0, ref_h0, atol=1e-5, rtol=1e-5)

    # bf16 matmul-operand path (MXU-optimized); state/elementwise math stays f32.
    packed_bf16 = pack_params(params, compute_dtype=jnp.bfloat16)
    out_b, h_new_b = gru_network_forward(x, h0, packed_bf16)
    jax.block_until_ready((out_b, h_new_b))
    assert jnp.allclose(out_b, ref_out, atol=5e-2, rtol=5e-2)
    assert jnp.allclose(h_new_b, ref_h, atol=5e-2, rtol=5e-2)

    print("KERNEL_OK")
</pallas_src>

<mosaic_0001>
module attributes {stable_mosaic.version = 11 : i64} {
  func.func @_gru_fc_kernel(%arg0: i32, %arg1: memref<8x128xf32, #tpu.memory_space<vmem>>, %arg2: memref<8x128xf32, #tpu.memory_space<vmem>>, %arg3: memref<128x384xf32, #tpu.memory_space<vmem>>, %arg4: memref<128x384xf32, #tpu.memory_space<vmem>>, %arg5: memref<1x384xf32, #tpu.memory_space<vmem>>, %arg6: memref<1x384xf32, #tpu.memory_space<vmem>>, %arg7: memref<128x128xf32, #tpu.memory_space<vmem>>, %arg8: memref<1x128xf32, #tpu.memory_space<vmem>>, %arg9: memref<8x128xf32, #tpu.memory_space<vmem>>, %arg10: memref<8x128xf32, #tpu.memory_space<vmem>>) attributes {dimension_semantics = [#tpu.dimension_semantics<parallel>], iteration_bounds = array<i64: 1>, scalar_prefetch = 0 : i64, scratch_operands = 0 : i64, tpu.core_type = #tpu.core_type<tc>, window_params = [{transform_indices = @transform_0, window_bounds = array<i64: 8, 128>}, {transform_indices = @transform_1, window_bounds = array<i64: 8, 128>}, {pipeline_mode = #tpu.pipeline_mode<synchronous>, transform_indices = @transform_2, window_bounds = array<i64: 128, 384>}, {pipeline_mode = #tpu.pipeline_mode<synchronous>, transform_indices = @transform_3, window_bounds = array<i64: 128, 384>}, {pipeline_mode = #tpu.pipeline_mode<synchronous>, transform_indices = @transform_4, window_bounds = array<i64: 1, 384>}, {pipeline_mode = #tpu.pipeline_mode<synchronous>, transform_indices = @transform_5, window_bounds = array<i64: 1, 384>}, {pipeline_mode = #tpu.pipeline_mode<synchronous>, transform_indices = @transform_6, window_bounds = array<i64: 128, 128>}, {pipeline_mode = #tpu.pipeline_mode<synchronous>, transform_indices = @transform_7, window_bounds = array<i64: 1, 128>}, {transform_indices = @transform_8, window_bounds = array<i64: 8, 128>}, {transform_indices = @transform_9, window_bounds = array<i64: 8, 128>}]} {
    %c0 = arith.constant 0 : index
    %c0_0 = arith.constant 0 : index
    %0 = vector.load %arg1[%c0, %c0_0] : memref<8x128xf32, #tpu.memory_space<vmem>>, vector<8x128xf32>
    %c0_1 = arith.constant 0 : index
    %c0_2 = arith.constant 0 : index
    %1 = vector.load %arg2[%c0_1, %c0_2] : memref<8x128xf32, #tpu.memory_space<vmem>>, vector<8x128xf32>
    %c0_3 = arith.constant 0 : index
    %c0_4 = arith.constant 0 : index
    %2 = vector.load %arg3[%c0_3, %c0_4] : memref<128x384xf32, #tpu.memory_space<vmem>>, vector<128x384xf32>
    %cst = arith.constant dense<0.000000e+00> : vector<8x384xf32>
    %3 = tpu.matmul %0, %2, %cst {dimension_numbers = #tpu.dot_dimension_numbers<[1], [0], [0], [1], [0, 0, 1, 1], [], []>} : vector<8x128xf32>, vector<128x384xf32>, vector<8x384xf32> -> vector<8x384xf32>
    %c0_5 = arith.constant 0 : index
    %c0_6 = arith.constant 0 : index
    %4 = vector.load %arg5[%c0_5, %c0_6] : memref<1x384xf32, #tpu.memory_space<vmem>>, vector<1x384xf32>
    %5 = vector.broadcast %4 : vector<1x384xf32> to vector<8x384xf32>
    %6 = arith.addf %3, %5 : vector<8x384xf32>
    %c0_7 = arith.constant 0 : index
    %c0_8 = arith.constant 0 : index
    %7 = vector.load %arg4[%c0_7, %c0_8] : memref<128x384xf32, #tpu.memory_space<vmem>>, vector<128x384xf32>
    %cst_9 = arith.constant dense<0.000000e+00> : vector<8x384xf32>
    %8 = tpu.matmul %1, %7, %cst_9 {dimension_numbers = #tpu.dot_dimension_numbers<[1], [0], [0], [1], [0, 0, 1, 1], [], []>} : vector<8x128xf32>, vector<128x384xf32>, vector<8x384xf32> -> vector<8x384xf32>
    %c0_10 = arith.constant 0 : index
    %c0_11 = arith.constant 0 : index
    %9 = vector.load %arg6[%c0_10, %c0_11] : memref<1x384xf32, #tpu.memory_space<vmem>>, vector<1x384xf32>
    %10 = vector.broadcast %9 : vector<1x384xf32> to vector<8x384xf32>
    %11 = arith.addf %8, %10 : vector<8x384xf32>
    %12 = vector.extract_strided_slice %6 {offsets = [0, 0], sizes = [8, 128], strides = [1, 1]} : vector<8x384xf32> to vector<8x128xf32>
    %13 = vector.extract_strided_slice %6 {offsets = [0, 128], sizes = [8, 128], strides = [1, 1]} : vector<8x384xf32> to vector<8x128xf32>
    %14 = vector.extract_strided_slice %6 {offsets = [0, 256], sizes = [8, 128], strides = [1, 1]} : vector<8x384xf32> to vector<8x128xf32>
    %15 = vector.extract_strided_slice %11 {offsets = [0, 0], sizes = [8, 128], strides = [1, 1]} : vector<8x384xf32> to vector<8x128xf32>
    %16 = vector.extract_strided_slice %11 {offsets = [0, 128], sizes = [8, 128], strides = [1, 1]} : vector<8x384xf32> to vector<8x128xf32>
    %17 = vector.extract_strided_slice %11 {offsets = [0, 256], sizes = [8, 128], strides = [1, 1]} : vector<8x384xf32> to vector<8x128xf32>
    %18 = arith.addf %12, %15 : vector<8x128xf32>
    %19 = arith.negf %18 : vector<8x128xf32>
    %20 = math.exp %19 : vector<8x128xf32>
    %cst_12 = arith.constant 1.000000e+00 : f32
    %21 = vector.broadcast %cst_12 : f32 to vector<8x128xf32>
    %22 = arith.addf %21, %20 : vector<8x128xf32>
    %23 = arith.divf %21, %22 : vector<8x128xf32>
    %24 = arith.addf %13, %16 : vector<8x128xf32>
    %25 = arith.negf %24 : vector<8x128xf32>
    %26 = math.exp %25 : vector<8x128xf32>
    %cst_13 = arith.constant 1.000000e+00 : f32
    %27 = vector.broadcast %cst_13 : f32 to vector<8x128xf32>
    %28 = arith.addf %27, %26 : vector<8x128xf32>
    %29 = arith.divf %27, %28 : vector<8x128xf32>
    %30 = arith.mulf %23, %17 : vector<8x128xf32>
    %31 = arith.addf %14, %30 : vector<8x128xf32>
    %32 = math.tanh %31 : vector<8x128xf32>
    %cst_14 = arith.constant 1.000000e+00 : f32
    %33 = vector.broadcast %cst_14 : f32 to vector<8x128xf32>
    %34 = arith.subf %33, %29 : vector<8x128xf32>
    %35 = arith.mulf %34, %32 : vector<8x128xf32>
    %36 = arith.mulf %29, %1 : vector<8x128xf32>
    %37 = arith.addf %35, %36 : vector<8x128xf32>
    %c0_15 = arith.constant 0 : index
    %c0_16 = arith.constant 0 : index
    %38 = vector.load %arg10[%c0_15, %c0_16] : memref<8x128xf32, #tpu.memory_space<vmem>>, vector<8x128xf32>
    tpu.vector_store %arg10[%c0_15, %c0_16], %37 {strides = array<i32>} : memref<8x128xf32, #tpu.memory_space<vmem>>, vector<8x128xf32>,
    %c0_17 = arith.constant 0 : index
    %c0_18 = arith.constant 0 : index
    %39 = vector.load %arg7[%c0_17, %c0_18] : memref<128x128xf32, #tpu.memory_space<vmem>>, vector<128x128xf32>
    %cst_19 = arith.constant dense<0.000000e+00> : vector<8x128xf32>
    %40 = tpu.matmul %37, %39, %cst_19 {dimension_numbers = #tpu.dot_dimension_numbers<[1], [0], [0], [1], [0, 0, 1, 1], [], []>} : vector<8x128xf32>, vector<128x128xf32>, vector<8x128xf32> -> vector<8x128xf32>
    %c0_20 = arith.constant 0 : index
    %c0_21 = arith.constant 0 : index
    %41 = vector.load %arg8[%c0_20, %c0_21] : memref<1x128xf32, #tpu.memory_space<vmem>>, vector<1x128xf32>
    %42 = vector.broadcast %41 : vector<1x128xf32> to vector<8x128xf32>
    %43 = arith.addf %40, %42 : vector<8x128xf32>
    %c0_22 = arith.constant 0 : index
    %c0_23 = arith.constant 0 : index
    %44 = vector.load %arg9[%c0_22, %c0_23] : memref<8x128xf32, #tpu.memory_space<vmem>>, vector<8x128xf32>
    tpu.vector_store %arg9[%c0_22, %c0_23], %43 {strides = array<i32>} : memref<8x128xf32, #tpu.memory_space<vmem>>, vector<8x128xf32>,
    return
  }
  func.func @transform_0(%arg0: i32) -> (i32, i32) {
    %c0_i32 = arith.constant 0 : i32
    %c0_i32_0 = arith.constant 0 : i32
    return %arg0, %c0_i32 : i32, i32
  }
  func.func @transform_1(%arg0: i32) -> (i32, i32) {
    %c0_i32 = arith.constant 0 : i32
    %c0_i32_0 = arith.constant 0 : i32
    return %arg0, %c0_i32 : i32, i32
  }
  func.func @transform_2(%arg0: i32) -> (i32, i32) {
    %c0_i32 = arith.constant 0 : i32
    %c0_i32_0 = arith.constant 0 : i32
    %c0_i32_1 = arith.constant 0 : i32
    return %c0_i32, %c0_i32_0 : i32, i32
  }
  func.func @transform_3(%arg0: i32) -> (i32, i32) {
    %c0_i32 = arith.constant 0 : i32
    %c0_i32_0 = arith.constant 0 : i32
    %c0_i32_1 = arith.constant 0 : i32
    return %c0_i32, %c0_i32_0 : i32, i32
  }
  func.func @transform_4(%arg0: i32) -> (i32, i32) {
    %c0_i32 = arith.constant 0 : i32
    %c0_i32_0 = arith.constant 0 : i32
    %c0_i32_1 = arith.constant 0 : i32
    return %c0_i32, %c0_i32_0 : i32, i32
  }
  func.func @transform_5(%arg0: i32) -> (i32, i32) {
    %c0_i32 = arith.constant 0 : i32
    %c0_i32_0 = arith.constant 0 : i32
    %c0_i32_1 = arith.constant 0 : i32
    return %c0_i32, %c0_i32_0 : i32, i32
  }
  func.func @transform_6(%arg0: i32) -> (i32, i32) {
    %c0_i32 = arith.constant 0 : i32
    %c0_i32_0 = arith.constant 0 : i32
    %c0_i32_1 = arith.constant 0 : i32
    return %c0_i32, %c0_i32_0 : i32, i32
  }
  func.func @transform_7(%arg0: i32) -> (i32, i32) {
    %c0_i32 = arith.constant 0 : i32
    %c0_i32_0 = arith.constant 0 : i32
    %c0_i32_1 = arith.constant 0 : i32
    return %c0_i32, %c0_i32_0 : i32, i32
  }
  func.func @transform_8(%arg0: i32) -> (i32, i32) {
    %c0_i32 = arith.constant 0 : i32
    %c0_i32_0 = arith.constant 0 : i32
    return %arg0, %c0_i32 : i32, i32
  }
  func.func @transform_9(%arg0: i32) -> (i32, i32) {
    %c0_i32 = arith.constant 0 : i32
    %c0_i32_0 = arith.constant 0 : i32
    return %arg0, %c0_i32 : i32, i32
  }
}

module attributes {stable_mosaic.version = 11 : i64} {
  func.func @_gru_fc_kernel(%arg0: i32, %arg1: memref<8x128xf32, #tpu.memory_space<vmem>>, %arg2: memref<8x128xf32, #tpu.memory_space<vmem>>, %arg3: memref<128x384xf32, #tpu.memory_space<vmem>>, %arg4: memref<128x384xf32, #tpu.memory_space<vmem>>, %arg5: memref<1x384xf32, #tpu.memory_space<vmem>>, %arg6: memref<1x384xf32, #tpu.memory_space<vmem>>, %arg7: memref<128x128xf32, #tpu.memory_space<vmem>>, %arg8: memref<1x128xf32, #tpu.memory_space<vmem>>, %arg9: memref<8x128xf32, #tpu.memory_space<vmem>>, %arg10: memref<8x128xf32, #tpu.memory_space<vmem>>) attributes {dimension_semantics = [#tpu.dimension_semantics<parallel>], iteration_bounds = array<i64: 1>, scalar_prefetch = 0 : i64, scratch_operands = 0 : i64, tpu.core_type = #tpu.core_type<tc>, window_params = [{transform_indices = @transform_0, window_bounds = array<i64: 8, 128>}, {transform_indices = @transform_1, window_bounds = array<i64: 8, 128>}, {pipeline_mode = #tpu.pipeline_mode<synchronous>, transform_indices = @transform_2, window_bounds = array<i64: 128, 384>}, {pipeline_mode = #tpu.pipeline_mode<synchronous>, transform_indices = @transform_3, window_bounds = array<i64: 128, 384>}, {pipeline_mode = #tpu.pipeline_mode<synchronous>, transform_indices = @transform_4, window_bounds = array<i64: 1, 384>}, {pipeline_mode = #tpu.pipeline_mode<synchronous>, transform_indices = @transform_5, window_bounds = array<i64: 1, 384>}, {pipeline_mode = #tpu.pipeline_mode<synchronous>, transform_indices = @transform_6, window_bounds = array<i64: 128, 128>}, {pipeline_mode = #tpu.pipeline_mode<synchronous>, transform_indices = @transform_7, window_bounds = array<i64: 1, 128>}, {transform_indices = @transform_8, window_bounds = array<i64: 8, 128>}, {transform_indices = @transform_9, window_bounds = array<i64: 8, 128>}]} {
    %c0 = arith.constant 0 : index
    %c0_0 = arith.constant 0 : index
    %0 = vector.load %arg1[%c0, %c0_0] : memref<8x128xf32, #tpu.memory_space<vmem>>, vector<8x128xf32>
    %c0_1 = arith.constant 0 : index
    %c0_2 = arith.constant 0 : index
    %1 = vector.load %arg2[%c0_1, %c0_2] : memref<8x128xf32, #tpu.memory_space<vmem>>, vector<8x128xf32>
    %c0_3 = arith.constant 0 : index
    %c0_4 = arith.constant 0 : index
    %2 = vector.load %arg3[%c0_3, %c0_4] : memref<128x384xf32, #tpu.memory_space<vmem>>, vector<128x384xf32>
    %cst = arith.constant dense<0.000000e+00> : vector<8x384xf32>
    %3 = tpu.matmul %0, %2, %cst {dimension_numbers = #tpu.dot_dimension_numbers<[1], [0], [0], [1], [0, 0, 1, 1], [], []>} : vector<8x128xf32>, vector<128x384xf32>, vector<8x384xf32> -> vector<8x384xf32>
    %c0_5 = arith.constant 0 : index
    %c0_6 = arith.constant 0 : index
    %4 = vector.load %arg5[%c0_5, %c0_6] : memref<1x384xf32, #tpu.memory_space<vmem>>, vector<1x384xf32>
    %5 = vector.broadcast %4 : vector<1x384xf32> to vector<8x384xf32>
    %6 = arith.addf %3, %5 : vector<8x384xf32>
    %c0_7 = arith.constant 0 : index
    %c0_8 = arith.constant 0 : index
    %7 = vector.load %arg4[%c0_7, %c0_8] : memref<128x384xf32, #tpu.memory_space<vmem>>, vector<128x384xf32>
    %cst_9 = arith.constant dense<0.000000e+00> : vector<8x384xf32>
    %8 = tpu.matmul %1, %7, %cst_9 {dimension_numbers = #tpu.dot_dimension_numbers<[1], [0], [0], [1], [0, 0, 1, 1], [], []>} : vector<8x128xf32>, vector<128x384xf32>, vector<8x384xf32> -> vector<8x384xf32>
    %c0_10 = arith.constant 0 : index
    %c0_11 = arith.constant 0 : index
    %9 = vector.load %arg6[%c0_10, %c0_11] : memref<1x384xf32, #tpu.memory_space<vmem>>, vector<1x384xf32>
    %10 = vector.broadcast %9 : vector<1x384xf32> to vector<8x384xf32>
    %11 = arith.addf %8, %10 : vector<8x384xf32>
    %12 = vector.extract_strided_slice %6 {offsets = [0, 0], sizes = [8, 128], strides = [1, 1]} : vector<8x384xf32> to vector<8x128xf32>
    %13 = vector.extract_strided_slice %6 {offsets = [0, 128], sizes = [8, 128], strides = [1, 1]} : vector<8x384xf32> to vector<8x128xf32>
    %14 = vector.extract_strided_slice %6 {offsets = [0, 256], sizes = [8, 128], strides = [1, 1]} : vector<8x384xf32> to vector<8x128xf32>
    %15 = vector.extract_strided_slice %11 {offsets = [0, 0], sizes = [8, 128], strides = [1, 1]} : vector<8x384xf32> to vector<8x128xf32>
    %16 = vector.extract_strided_slice %11 {offsets = [0, 128], sizes = [8, 128], strides = [1, 1]} : vector<8x384xf32> to vector<8x128xf32>
    %17 = vector.extract_strided_slice %11 {offsets = [0, 256], sizes = [8, 128], strides = [1, 1]} : vector<8x384xf32> to vector<8x128xf32>
    %18 = arith.addf %12, %15 : vector<8x128xf32>
    %19 = arith.negf %18 : vector<8x128xf32>
    %20 = math.exp %19 : vector<8x128xf32>
    %cst_12 = arith.constant 1.000000e+00 : f32
    %21 = vector.broadcast %cst_12 : f32 to vector<8x128xf32>
    %22 = arith.addf %21, %20 : vector<8x128xf32>
    %23 = arith.divf %21, %22 : vector<8x128xf32>
    %24 = arith.addf %13, %16 : vector<8x128xf32>
    %25 = arith.negf %24 : vector<8x128xf32>
    %26 = math.exp %25 : vector<8x128xf32>
    %cst_13 = arith.constant 1.000000e+00 : f32
    %27 = vector.broadcast %cst_13 : f32 to vector<8x128xf32>
    %28 = arith.addf %27, %26 : vector<8x128xf32>
    %29 = arith.divf %27, %28 : vector<8x128xf32>
    %30 = arith.mulf %23, %17 : vector<8x128xf32>
    %31 = arith.addf %14, %30 : vector<8x128xf32>
    %32 = math.tanh %31 : vector<8x128xf32>
    %cst_14 = arith.constant 1.000000e+00 : f32
    %33 = vector.broadcast %cst_14 : f32 to vector<8x128xf32>
    %34 = arith.subf %33, %29 : vector<8x128xf32>
    %35 = arith.mulf %34, %32 : vector<8x128xf32>
    %36 = arith.mulf %29, %1 : vector<8x128xf32>
    %37 = arith.addf %35, %36 : vector<8x128xf32>
    %c0_15 = arith.constant 0 : index
    %c0_16 = arith.constant 0 : index
    %38 = vector.load %arg10[%c0_15, %c0_16] : memref<8x128xf32, #tpu.memory_space<vmem>>, vector<8x128xf32>
    tpu.vector_store %arg10[%c0_15, %c0_16], %37 {strides = array<i32>} : memref<8x128xf32, #tpu.memory_space<vmem>>, vector<8x128xf32>,
    %c0_17 = arith.constant 0 : index
    %c0_18 = arith.constant 0 : index
    %39 = vector.load %arg7[%c0_17, %c0_18] : memref<128x128xf32, #tpu.memory_space<vmem>>, vector<128x128xf32>
    %cst_19 = arith.constant dense<0.000000e+00> : vector<8x128xf32>
    %40 = tpu.matmul %37, %39, %cst_19 {dimension_numbers = #tpu.dot_dimension_numbers<[1], [0], [0], [1], [0, 0, 1, 1], [], []>} : vector<8x128xf32>, vector<128x128xf32>, vector<8x128xf32> -> vector<8x128xf32>
    %c0_20 = arith.constant 0 : index
    %c0_21 = arith.constant 0 : index
    %41 = vector.load %arg8[%c0_20, %c0_21] : memref<1x128xf32, #tpu.memory_space<vmem>>, vector<1x128xf32>
    %42 = vector.broadcast %41 : vector<1x128xf32> to vector<8x128xf32>
    %43 = arith.addf %40, %42 : vector<8x128xf32>
    %c0_22 = arith.constant 0 : index
    %c0_23 = arith.constant 0 : index
    %44 = vector.load %arg9[%c0_22, %c0_23] : memref<8x128xf32, #tpu.memory_space<vmem>>, vector<8x128xf32>
    tpu.vector_store %arg9[%c0_22, %c0_23], %43 {strides = array<i32>} : memref<8x128xf32, #tpu.memory_space<vmem>>, vector<8x128xf32>,
    return
  }
  func.func @transform_0(%arg0: i32) -> (i32, i32) {
    %c0_i32 = arith.constant 0 : i32
    %c0_i32_0 = arith.constant 0 : i32
    return %arg0, %c0_i32 : i32, i32
  }
  func.func @transform_1(%arg0: i32) -> (i32, i32) {
    %c0_i32 = arith.constant 0 : i32
    %c0_i32_0 = arith.constant 0 : i32
    return %arg0, %c0_i32 : i32, i32
  }
  func.func @transform_2(%arg0: i32) -> (i32, i32) {
    %c0_i32 = arith.constant 0 : i32
    %c0_i32_0 = arith.constant 0 : i32
    %c0_i32_1 = arith.constant 0 : i32
    return %c0_i32, %c0_i32_0 : i32, i32
  }
  func.func @transform_3(%arg0: i32) -> (i32, i32) {
    %c0_i32 = arith.constant 0 : i32
    %c0_i32_0 = arith.constant 0 : i32
    %c0_i32_1 = arith.constant 0 : i32
    return %c0_i32, %c0_i32_0 : i32, i32
  }
  func.func @transform_4(%arg0: i32) -> (i32, i32) {
    %c0_i32 = arith.constant 0 : i32
    %c0_i32_0 = arith.constant 0 : i32
    %c0_i32_1 = arith.constant 0 : i32
    return %c0_i32, %c0_i32_0 : i32, i32
  }
  func.func @transform_5(%arg0: i32) -> (i32, i32) {
    %c0_i32 = arith.constant 0 : i32
    %c0_i32_0 = arith.constant 0 : i32
    %c0_i32_1 = arith.constant 0 : i32
    return %c0_i32, %c0_i32_0 : i32, i32
  }
  func.func @transform_6(%arg0: i32) -> (i32, i32) {
    %c0_i32 = arith.constant 0 : i32
    %c0_i32_0 = arith.constant 0 : i32
    %c0_i32_1 = arith.constant 0 : i32
    return %c0_i32, %c0_i32_0 : i32, i32
  }
  func.func @transform_7(%arg0: i32) -> (i32, i32) {
    %c0_i32 = arith.constant 0 : i32
    %c0_i32_0 = arith.constant 0 : i32
    %c0_i32_1 = arith.constant 0 : i32
    return %c0_i32, %c0_i32_0 : i32, i32
  }
  func.func @transform_8(%arg0: i32) -> (i32, i32) {
    %c0_i32 = arith.constant 0 : i32
    %c0_i32_0 = arith.constant 0 : i32
    return %arg0, %c0_i32 : i32, i32
  }
  func.func @transform_9(%arg0: i32) -> (i32, i32) {
    %c0_i32 = arith.constant 0 : i32
    %c0_i32_0 = arith.constant 0 : i32
    return %arg0, %c0_i32 : i32, i32
  }
}

</mosaic_0001>

<bundles_post_ra>
// kernel: tpu_custom_call.1
= control target key start
LH: loop header
LB: loop body
LE: loop exit
PB: predicated region body
PF: predicated region fallthrough
CT: control target
= control target key end

     0   :  { %15 = vsyncpa [#allocation3], 0  ;;  %s822_s0 = inlined_call_operand.hbm [shape: f32[8,128], index: 0, kind: input, shape index: {}]   ;;  %s823_s1 = inlined_call_operand.hbm [shape: f32[8,128], index: 1, kind: input, shape index: {}]   ;;  %s824_s2 = inlined_call_operand.hbm [shape: f32[128,384], index: 2, kind: input, shape index: {}]   ;;  %s825_s3 = inlined_call_operand.hbm [shape: f32[128,384], index: 3, kind: input, shape index: {}]   ;;  %s826_s4 = inlined_call_operand.vmem [shape: f32[1,384], index: 4, kind: input, shape index: {}]   ;;  %s827_s5 = inlined_call_operand.hbm [shape: f32[1,384], index: 5, kind: input, shape index: {}]   ;;  %s828_s6 = inlined_call_operand.hbm [shape: f32[128,128], index: 6, kind: input, shape index: {}]   ;;  %s829_s7 = inlined_call_operand.vmem [shape: f32[1,128], index: 7, kind: input, shape index: {}]   ;;  %s830_s8 = inlined_call_operand.hbm [shape: f32[8,128], index: 8, kind: output, shape index: {0}]   ;;  %s831_s9 = inlined_call_operand.hbm [shape: f32[8,128], index: 9, kind: output, shape index: {1}]  }
   0x1   :  { %16 = vsyncpa [#allocation6], 0 }
   0x2   :  { %17 = vsyncpa [#allocation9], 0 }
   0x3   :  { %18 = vsyncpa [#allocation12], 0 }
   0x4   :  { %19 = vsyncpa [#allocation4], 0  ;;  %s37_s11 = sshll.u32 %s823_s1, 4  ;;  %s38_s11 = int_to_ptr.hbm [resolvable:$true] %s37_s11 }
   0x5   :  { %20 = vsyncpa [#allocation15], 0  ;;  %s709_s12 = smov [#allocation5]   ;;  %s60_s16 = sshll.u32 %s825_s3, 4  ;;  %s61_s16 = int_to_ptr.hbm [resolvable:$true] %s60_s16 }
   0x6   :  { %s39_s13 = sshll.u32 %s709_s12, 4  ;;  %s710_s17 = smov [#allocation8]   ;;  %s40_s13 = int_to_ptr.vmem [resolvable:$true] %s39_s13 }
   0x7   :  { %42 = dma.hbm_to_vmem [thread:$0]  %s38_s11, 128, %s40_s13, [#allocation6]  }
   0x8   :  { %s62_s18 = sshll.u32 %s710_s17, 4  ;;  %s26_s21 = sshll.u32 %s822_s0, 4  ;;  %s63_s18 = int_to_ptr.vmem [resolvable:$true] %s62_s18  ;;  %s27_s21 = int_to_ptr.hbm [resolvable:$true] %s26_s21 }
   0x9   :  { %s711_s1 = smov 384   ;;  %s712_s22 = smov 24  }
   0xa   :  { %68 = dma.hbm_to_vmem [thread:$0]  %s61_s16, 6144, %s63_s18, [#allocation9], %s711_s1, %s711_s1, %s712_s22  }
   0xb   :  { %s47_s25 = sshll.u32 %s824_s2, 4  ;;  %s713_s26 = smov [#allocation2]   ;;  %s48_s25 = int_to_ptr.hbm [resolvable:$true] %s47_s25 }
   0xc   :  { %s28_s27 = sshll.u32 %s713_s26, 4  ;;  %s714_s3 = smov [#allocation7]   ;;  %s29_s27 = int_to_ptr.vmem [resolvable:$true] %s28_s27 }
   0xd   :  { %31 = dma.hbm_to_vmem [thread:$0]  %s27_s21, 128, %s29_s27, [#allocation3]  }
   0xe   :  { %s49_s28 = sshll.u32 %s714_s3, 4  ;;  %s76_s0 = sshll.u32 %s827_s5, 4  ;;  %s50_s28 = int_to_ptr.vmem [resolvable:$true] %s49_s28  ;;  %s77_s0 = int_to_ptr.hbm [resolvable:$true] %s76_s0 }
   0xf   :  { %55 = dma.hbm_to_vmem [thread:$0]  %s48_s25, 6144, %s50_s28, [#allocation6], %s711_s1, %s711_s1, %s712_s22  }
  0x10   :  { %s86_s12 = sshll.u32 %s828_s6, 4  ;;  %s715_s13 = smov [#allocation10]   ;;  %s87_s12 = int_to_ptr.hbm [resolvable:$true] %s86_s12 }
  0x11   :  { %s78_s2 = sshll.u32 %s715_s13, 4  ;;  %s716_s14 = smov [#allocation11]   ;;  %s79_s2 = int_to_ptr.vmem [resolvable:$true] %s78_s2 }
  0x12   :  { %81 = dma.hbm_to_vmem [thread:$0]  %s77_s0, 48, %s79_s2, [#allocation9]  }
  0x13   :  { %s88_s15 = sshll.u32 %s716_s14, 4  ;;  %s717_s16 = smov 128   ;;  %s89_s15 = int_to_ptr.vmem [resolvable:$true] %s88_s15 }
  0x14   :  { %s718_s17 = smov 8  }
  0x15   :  { %94 = dma.hbm_to_vmem [thread:$0]  %s87_s12, 2048, %s89_s15, [#allocation12], %s717_s16, %s717_s16, %s718_s17  }
  0x16   :  { %697 = dma.done.wait [#allocation3], 128  }
  0x17   :  { %698 = vsyncadd [#allocation3], 4294967168 }
  0x18   :  { %699 = dma.done.wait [#allocation6], 6272  }
  0x19   :  { %700 = vsyncadd [#allocation6], 4294961024 }
  0x1a   :  { %701 = dma.done.wait [#allocation9], 6192  }
  0x1b   :  { %702 = vsyncadd [#allocation9], 4294961104 }
  0x1c   :  { %703 = dma.done.wait [#allocation12], 2048  }
  0x1d   :  { %704 = vsyncadd [#allocation12], 4294965248  ;;  %v168_v0 = vld [vmem:[#allocation7 + $0x168] sm:$0xff]  ;;  %v165_v1 = vld [vmem:[#allocation7 + $0x150] sm:$0xff]  ;;  %s462_s21 = sshll.u32 %s831_s9, 4  ;;  %s720_s23 = smov [#allocation13]   ;;  %s463_s21 = int_to_ptr.hbm [resolvable:$true] %s462_s21 }
  0x1e   :  { %v284_v2 = vld [vmem:[#allocation8 + $0x168] sm:$0xff]  ;;  %179 = vmatpush.msra.mxu0 %v168_v0  ;;  %v281_v3 = vld [vmem:[#allocation8 + $0x150] sm:$0xff]  ;;  %v162_v4 = vld [vmem:[#allocation7 + $0x138] sm:$0xff]  ;;  %s449_s24 = sshll.u32 %s720_s23, 4  ;;  %s451_s27 = sshll.u32 %s830_s8, 4  ;;  %s450_s24 = int_to_ptr.vmem [resolvable:$true] %s449_s24  ;;  %s452_s27 = int_to_ptr.hbm [resolvable:$true] %s451_s27 }
  0x1f   :  { %295 = vmatpush.msra.mxu3 %v284_v2  ;;  %v278_v5 = vld [vmem:[#allocation8 + $0x138] sm:$0xff]  ;;  %v169_v6 = vld [vmem:[#allocation7 + $0x170] sm:$0xff]  ;;  %v159_v8 = vld [vmem:[#allocation7 + $0x120] sm:$0xff] }
  0x20   :  { %180 = vmatpush.msra.mxu0 %v165_v1  ;;  %v166_v7 = vld [vmem:[#allocation7 + $0x158] sm:$0xff]  ;;  %199 = vmatpush.msra.mxu1 %v169_v6  ;;  %v275_v9 = vld [vmem:[#allocation8 + $0x120] sm:$0xff]  ;;  %v156_v11 = vld [vmem:[#allocation7 + $0x108] sm:$0xff] }
  0x21   :  { %296 = vmatpush.msra.mxu3 %v281_v3  ;;  %v163_v10 = vld [vmem:[#allocation7 + $0x140] sm:$0xff]  ;;  %v272_v12 = vld [vmem:[#allocation8 + $0x108] sm:$0xff]  ;;  %v153_v14 = vld [vmem:[#allocation7 + $0xf0] sm:$0xff] }
  0x22   :  { %181 = vmatpush.msra.mxu0 %v162_v4  ;;  %200 = vmatpush.msra.mxu1 %v166_v7  ;;  %v160_v13 = vld [vmem:[#allocation7 + $0x128] sm:$0xff]  ;;  %v269_v15 = vld [vmem:[#allocation8 + $0xf0] sm:$0xff]  ;;  %v150_v17 = vld [vmem:[#allocation7 + $0xd8] sm:$0xff] }
  0x23   :  { %297 = vmatpush.msra.mxu3 %v278_v5  ;;  %v157_v16 = vld [vmem:[#allocation7 + $0x110] sm:$0xff]  ;;  %v266_v18 = vld [vmem:[#allocation8 + $0xd8] sm:$0xff]  ;;  %v147_v20 = vld [vmem:[#allocation7 + $0xc0] sm:$0xff] }
  0x24   :  { %182 = vmatpush.msra.mxu0 %v159_v8  ;;  %201 = vmatpush.msra.mxu1 %v163_v10  ;;  %v154_v19 = vld [vmem:[#allocation7 + $0xf8] sm:$0xff]  ;;  %v263_v21 = vld [vmem:[#allocation8 + $0xc0] sm:$0xff]  ;;  %v144_v23 = vld [vmem:[#allocation7 + $0xa8] sm:$0xff] }
  0x25   :  { %298 = vmatpush.msra.mxu3 %v275_v9  ;;  %v151_v22 = vld [vmem:[#allocation7 + $0xe0] sm:$0xff]  ;;  %v260_v24 = vld [vmem:[#allocation8 + $0xa8] sm:$0xff]  ;;  %v141_v26 = vld [vmem:[#allocation7 + $0x90] sm:$0xff] }
  0x26   :  { %183 = vmatpush.msra.mxu0 %v156_v11  ;;  %202 = vmatpush.msra.mxu1 %v160_v13  ;;  %v148_v25 = vld [vmem:[#allocation7 + $0xc8] sm:$0xff]  ;;  %v257_v27 = vld [vmem:[#allocation8 + $0x90] sm:$0xff]  ;;  %v170_v28 = vld [vmem:[#allocation7 + $0x178] sm:$0xff] }
  0x27   :  { %299 = vmatpush.msra.mxu3 %v272_v12  ;;  %v145_v29 = vld [vmem:[#allocation7 + $0xb0] sm:$0xff]  ;;  %v167_v30 = vld [vmem:[#allocation7 + $0x160] sm:$0xff]  ;;  %v138_v31 = vld [vmem:[#allocation7 + $0x78] sm:$0xff]  ;;  %219 = vmatpush.msra.mxu2 %v170_v28 }
  0x28   :  { %184 = vmatpush.msra.mxu0 %v153_v14  ;;  %203 = vmatpush.msra.mxu1 %v157_v16  ;;  %v254_v32 = vld [vmem:[#allocation8 + $0x78] sm:$0xff]  ;;  %v164_v34 = vld [vmem:[#allocation7 + $0x148] sm:$0xff]  ;;  %v135_v35 = vld [vmem:[#allocation7 + $0x60] sm:$0xff] }
  0x29   :  { %300 = vmatpush.msra.mxu3 %v269_v15  ;;  %v142_v33 = vld [vmem:[#allocation7 + $0x98] sm:$0xff]  ;;  %v251_v36 = vld [vmem:[#allocation8 + $0x60] sm:$0xff]  ;;  %220 = vmatpush.msra.mxu2 %v167_v30  ;;  %v161_v38 = vld [vmem:[#allocation7 + $0x130] sm:$0xff] }
  0x2a   :  { %185 = vmatpush.msra.mxu0 %v150_v17  ;;  %204 = vmatpush.msra.mxu1 %v154_v19  ;;  %v139_v37 = vld [vmem:[#allocation7 + $0x80] sm:$0xff]  ;;  %v132_v39 = vld [vmem:[#allocation7 + $0x48] sm:$0xff]  ;;  %v158_v42 = vld [vmem:[#allocation7 + $0x118] sm:$0xff] }
  0x2b   :  { %301 = vmatpush.msra.mxu3 %v266_v18  ;;  %v248_v40 = vld [vmem:[#allocation8 + $0x48] sm:$0xff]  ;;  %221 = vmatpush.msra.mxu2 %v164_v34  ;;  %v129_v43 = vld [vmem:[#allocation7 + $0x30] sm:$0xff]  ;;  %v155_v46 = vld [vmem:[#allocation7 + $0x100] sm:$0xff] }
  0x2c   :  { %186 = vmatpush.msra.mxu0 %v147_v20  ;;  %205 = vmatpush.msra.mxu1 %v151_v22  ;;  %v136_v41 = vld [vmem:[#allocation7 + $0x68] sm:$0xff]  ;;  %v245_v44 = vld [vmem:[#allocation8 + $0x30] sm:$0xff]  ;;  %v126_v47 = vld [vmem:[#allocation7 + $0x18] sm:$0xff] }
  0x2d   :  { %302 = vmatpush.msra.mxu3 %v263_v21  ;;  %222 = vmatpush.msra.mxu2 %v161_v38  ;;  %v133_v45 = vld [vmem:[#allocation7 + $0x50] sm:$0xff]  ;;  %v242_v48 = vld [vmem:[#allocation8 + $0x18] sm:$0xff]  ;;  %v152_v50 = vld [vmem:[#allocation7 + $0xe8] sm:$0xff] }
  0x2e   :  { %187 = vmatpush.msra.mxu0 %v144_v23  ;;  %206 = vmatpush.msra.mxu1 %v148_v25  ;;  %v130_v49 = vld [vmem:[#allocation7 + $0x38] sm:$0xff]  ;;  %v123_v51 = vld [vmem:[#allocation7] sm:$0xff]  ;;  %v285_v53 = vld [vmem:[#allocation8 + $0x170] sm:$0xff] }
  0x2f   :  { %303 = vmatpush.msra.mxu3 %v260_v24  ;;  %223 = vmatpush.msra.mxu2 %v158_v42  ;;  %v239_v52 = vld [vmem:[#allocation8] sm:$0xff]  ;;  %v789_v54 = vld [vmem:[#allocation5] sm:$0xff]  ;;  %v791_v56 = vld [vmem:[#allocation2] sm:$0xff] }
  0x30   :  { %188 = vmatpush.msra.mxu0 %v141_v26  ;;  %207 = vmatpush.msra.mxu1 %v145_v29  ;;  %v127_v55 = vld [vmem:[#allocation7 + $0x20] sm:$0xff]  ;;  %v282_v57 = vld [vmem:[#allocation8 + $0x158] sm:$0xff]  ;;  %v149_v58 = vld [vmem:[#allocation7 + $0xd0] sm:$0xff] }
  0x31   :  { %304 = vmatpush.msra.mxu3 %v257_v27  ;;  %224 = vmatpush.msra.mxu2 %v155_v46  ;;  %v124_v59 = vld [vmem:[#allocation7 + $0x8] sm:$0xff]  ;;  %v279_v60 = vld [vmem:[#allocation8 + $0x140] sm:$0xff]  ;;  %v286_v61 = vld [vmem:[#allocation8 + $0x178] sm:$0xff] }
  0x32   :  { %189 = vmatpush.msra.mxu0 %v138_v31  ;;  %208 = vmatpush.msra.mxu1 %v142_v33  ;;  %v146_v62 = vld [vmem:[#allocation7 + $0xb8] sm:$0xff]  ;;  %v276_v63 = vld [vmem:[#allocation8 + $0x128] sm:$0xff]  ;;  %v283_v0 = vld [vmem:[#allocation8 + $0x160] sm:$0xff] }
  0x33   :  { %305 = vmatpush.msra.mxu3 %v254_v32  ;;  %225 = vmatpush.msra.mxu2 %v152_v50  ;;  %v143_v1 = vld [vmem:[#allocation7 + $0xa0] sm:$0xff]  ;;  %v273_v2 = vld [vmem:[#allocation8 + $0x110] sm:$0xff]  ;;  %v280_v3 = vld [vmem:[#allocation8 + $0x148] sm:$0xff] }
  0x34   :  { %190 = vmatpush.msra.mxu0 %v135_v35  ;;  %209 = vmatpush.msra.mxu1 %v139_v37  ;;  %v140_v4 = vld [vmem:[#allocation7 + $0x88] sm:$0xff]  ;;  %v270_v5 = vld [vmem:[#allocation8 + $0xf8] sm:$0xff]  ;;  %v277_v6 = vld [vmem:[#allocation8 + $0x130] sm:$0xff] }
  0x35   :  { %306 = vmatpush.msra.mxu3 %v251_v36  ;;  %226 = vmatpush.msra.mxu2 %v149_v58  ;;  %v137_v7 = vld [vmem:[#allocation7 + $0x70] sm:$0xff]  ;;  %v267_v8 = vld [vmem:[#allocation8 + $0xe0] sm:$0xff]  ;;  %v274_v9 = vld [vmem:[#allocation8 + $0x118] sm:$0xff] }
  0x36   :  { %191 = vmatpush.msra.mxu0 %v132_v39  ;;  %210 = vmatpush.msra.mxu1 %v136_v41  ;;  %v134_v10 = vld [vmem:[#allocation7 + $0x58] sm:$0xff]  ;;  %v264_v11 = vld [vmem:[#allocation8 + $0xc8] sm:$0xff]  ;;  %v271_v12 = vld [vmem:[#allocation8 + $0x100] sm:$0xff] }
  0x37   :  { %307 = vmatpush.msra.mxu3 %v248_v40  ;;  %227 = vmatpush.msra.mxu2 %v146_v62  ;;  %v131_v13 = vld [vmem:[#allocation7 + $0x40] sm:$0xff]  ;;  %v261_v14 = vld [vmem:[#allocation8 + $0xb0] sm:$0xff]  ;;  %v268_v15 = vld [vmem:[#allocation8 + $0xe8] sm:$0xff] }
  0x38   :  { %192 = vmatpush.msra.mxu0 %v129_v43  ;;  %211 = vmatpush.msra.mxu1 %v133_v45  ;;  %v128_v16 = vld [vmem:[#allocation7 + $0x28] sm:$0xff]  ;;  %v258_v17 = vld [vmem:[#allocation8 + $0x98] sm:$0xff]  ;;  %v265_v18 = vld [vmem:[#allocation8 + $0xd0] sm:$0xff] }
  0x39   :  { %308 = vmatpush.msra.mxu3 %v245_v44  ;;  %228 = vmatpush.msra.mxu2 %v143_v1  ;;  %v125_v19 = vld [vmem:[#allocation7 + $0x10] sm:$0xff]  ;;  %v255_v20 = vld [vmem:[#allocation8 + $0x80] sm:$0xff]  ;;  %v262_v21 = vld [vmem:[#allocation8 + $0xb8] sm:$0xff] }
  0x3a   :  { %193 = vmatpush.msra.mxu0 %v126_v47  ;;  %212 = vmatpush.msra.mxu1 %v130_v49  ;;  %v252_v22 = vld [vmem:[#allocation8 + $0x68] sm:$0xff]  ;;  %v259_v23 = vld [vmem:[#allocation8 + $0xa0] sm:$0xff]  ;;  %v249_v24 = vld [vmem:[#allocation8 + $0x50] sm:$0xff] }
  0x3b   :  { %309 = vmatpush.msra.mxu3 %v242_v48  ;;  %229 = vmatpush.msra.mxu2 %v140_v4  ;;  %v256_v25 = vld [vmem:[#allocation8 + $0x88] sm:$0xff]  ;;  %v246_v26 = vld [vmem:[#allocation8 + $0x38] sm:$0xff]  ;;  %v253_v27 = vld [vmem:[#allocation8 + $0x70] sm:$0xff] }
  0x3c   :  { %194 = vmatpush.msra.mxu0 %v123_v51  ;;  %213 = vmatpush.msra.mxu1 %v127_v55  ;;  %v243_v28 = vld [vmem:[#allocation8 + $0x20] sm:$0xff]  ;;  %v250_v29 = vld [vmem:[#allocation8 + $0x58] sm:$0xff]  ;;  %v240_v30 = vld [vmem:[#allocation8 + $0x8] sm:$0xff] }
  0x3d   :  { %310 = vmatpush.msra.mxu3 %v239_v52  ;;  %195 = vmatmul.f32.vlgmr.msra.gmra.mxu0 %v791_v56  ;;  %v247_v31 = vld [vmem:[#allocation8 + $0x40] sm:$0xff]  ;;  %v244_v32 = vld [vmem:[#allocation8 + $0x28] sm:$0xff]  ;;  %v241_v33 = vld [vmem:[#allocation8 + $0x10] sm:$0xff] }
  0x3e   :  { %315 = vmatpush.msrb.mxu0 %v285_v53  ;;  %311 = vmatmul.f32.vlgmr.msra.gmra.mxu3 %v789_v54  ;;  %v802_v34 = vld [vmem:[%s826_s4] sm:$0x7]  ;;  %v804_v35 = vld [vmem:[#allocation10] sm:$0x7]  ;;  %v417_v43 = vld [vmem:[#allocation11 + $0x70] sm:$0xff]  ;;  %s719_s4 = smov [#allocation14]  }
  0x3f   :  { %214 = vmatpush.msra.mxu1 %v124_v59  ;;  %230 = vmatpush.msra.mxu2 %v137_v7  ;;  %v173_v36 = vperm.slane %v802_v34, 0  ;;  %v289_v38 = vperm.slane %v804_v35, 0  ;;  %v418_v41 = vld [vmem:[#allocation11 + $0x78] sm:$0xff]  ;;  %v416_v45 = vld [vmem:[#allocation11 + $0x68] sm:$0xff]  ;;  %v415_v47 = vld [vmem:[#allocation11 + $0x60] sm:$0xff]  ;;  %v174_v58 = vperm.slane %v802_v34, 1 }
  0x40   :  { %316 = vmatpush.msrb.mxu0 %v282_v57  ;;  %215 = vmatmul.f32.vlgmr.msra.gmra.mxu1 %v791_v56  ;;  %v414_v48 = vld [vmem:[#allocation11 + $0x58] sm:$0xff]  ;;  %v413_v49 = vld [vmem:[#allocation11 + $0x50] sm:$0xff]  ;;  %v412_v50 = vld [vmem:[#allocation11 + $0x48] sm:$0xff]  ;;  %v290_v62 = vperm.slane %v804_v35, 1  ;;  %s460_s18 = sshll.u32 %s719_s4, 4  ;;  %s461_s18 = int_to_ptr.vmem [resolvable:$true] %s460_s18 }
  0x41   :  { %335 = vmatpush.msrb.mxu1 %v286_v61  ;;  %231 = vmatpush.msra.mxu2 %v134_v10  ;;  %v411_v53 = vld [vmem:[#allocation11 + $0x40] sm:$0xff]  ;;  %v410_v55 = vld [vmem:[#allocation11 + $0x38] sm:$0xff]  ;;  %v408_v57 = vld [vmem:[#allocation11 + $0x28] sm:$0xff] }
  0x42   :  { %317 = vmatpush.msrb.mxu0 %v279_v60  ;;  %v407_v59 = vld [vmem:[#allocation11 + $0x20] sm:$0xff] }
  0x43   :  { %336 = vmatpush.msrb.mxu1 %v283_v0  ;;  %232 = vmatpush.msra.mxu2 %v131_v13 }
  0x44   :  { %318 = vmatpush.msrb.mxu0 %v276_v63  ;;  %v406_v63 = vld [vmem:[#allocation11 + $0x18] sm:$0xff] }
  0x45   :  { %337 = vmatpush.msrb.mxu1 %v280_v3  ;;  %233 = vmatpush.msra.mxu2 %v128_v16 }
  0x46   :  { %319 = vmatpush.msrb.mxu0 %v273_v2  ;;  %v405_v2 = vld [vmem:[#allocation11 + $0x10] sm:$0xff] }
  0x47   :  { %338 = vmatpush.msrb.mxu1 %v277_v6  ;;  %234 = vmatpush.msra.mxu2 %v125_v19 }
  0x48   :  { %320 = vmatpush.msrb.mxu0 %v270_v5  ;;  %235 = vmatmul.f32.vlgmr.msra.gmra.mxu2 %v791_v56  ;;  %v409_v56 = vld [vmem:[#allocation11 + $0x30] sm:$0xff]  ;;  %v404_v5 = vld [vmem:[#allocation11 + $0x8] sm:$0xff] }
  0x49   :  { %339 = vmatpush.msrb.mxu1 %v274_v9  ;;  %423 = vmatpush.msrb.mxu2 %v418_v41 }
  0x4a   :  { %321 = vmatpush.msrb.mxu0 %v267_v8  ;;  %v403_v8 = vld [vmem:[#allocation11] sm:$0xff] }
  0x4b   :  { %340 = vmatpush.msrb.mxu1 %v271_v12  ;;  %424 = vmatpush.msrb.mxu2 %v417_v43 }
  0x4c   :  { %322 = vmatpush.msrb.mxu0 %v264_v11 }
  0x4d   :  { %341 = vmatpush.msrb.mxu1 %v268_v15  ;;  %425 = vmatpush.msrb.mxu2 %v416_v45 }
  0x4e   :  { %323 = vmatpush.msrb.mxu0 %v261_v14  ;;  %v291_v14 = vperm.slane %v804_v35, 2 }
  0x4f   :  { %342 = vmatpush.msrb.mxu1 %v265_v18  ;;  %426 = vmatpush.msrb.mxu2 %v415_v47 }
  0x50   :  { %324 = vmatpush.msrb.mxu0 %v258_v17 }
  0x51   :  { %343 = vmatpush.msrb.mxu1 %v262_v21  ;;  %427 = vmatpush.msrb.mxu2 %v414_v48  ;;  %v175_v21 = vperm.slane %v802_v34, 2 }
  0x52   :  { %325 = vmatpush.msrb.mxu0 %v255_v20 }
  0x53   :  { %344 = vmatpush.msrb.mxu1 %v259_v23  ;;  %428 = vmatpush.msrb.mxu2 %v413_v49 }
  0x54   :  { %326 = vmatpush.msrb.mxu0 %v252_v22 }
  0x55   :  { %345 = vmatpush.msrb.mxu1 %v256_v25  ;;  %429 = vmatpush.msrb.mxu2 %v412_v50 }
  0x56   :  { %327 = vmatpush.msrb.mxu0 %v249_v24 }
  0x57   :  { %346 = vmatpush.msrb.mxu1 %v253_v27  ;;  %430 = vmatpush.msrb.mxu2 %v411_v53 }
  0x58   :  { %328 = vmatpush.msrb.mxu0 %v246_v26 }
  0x59   :  { %347 = vmatpush.msrb.mxu1 %v250_v29  ;;  %431 = vmatpush.msrb.mxu2 %v410_v55 }
  0x5a   :  { %329 = vmatpush.msrb.mxu0 %v243_v28 }
  0x5b   :  { %348 = vmatpush.msrb.mxu1 %v247_v31  ;;  %432 = vmatpush.msrb.mxu2 %v409_v56 }
  0x5c   :  { %330 = vmatpush.msrb.mxu0 %v240_v30 }
  0x5d   :  { %331 = vmatmul.f32.vlgmr.msrb.gmra.mxu0 %v789_v54  ;;  %349 = vmatpush.msrb.mxu1 %v244_v32 }
  0x5e   :  { %433 = vmatpush.msrb.mxu2 %v408_v57 }
  0x5f   :  { %350 = vmatpush.msrb.mxu1 %v241_v33 }
  0x60   :  { %351 = vmatmul.f32.vlgmr.msrb.gmra.mxu1 %v789_v54  ;;  %434 = vmatpush.msrb.mxu2 %v407_v59 }
  0x62   :  { %435 = vmatpush.msrb.mxu2 %v406_v63 }
  0x64   :  { %436 = vmatpush.msrb.mxu2 %v405_v2 }
  0x66   :  { %437 = vmatpush.msrb.mxu2 %v404_v5 }
  0x68   :  { %438 = vmatpush.msrb.mxu2 %v403_v8 }
  0xba   :  { %v196_v37 = vpop.f32.mrf.mxu0 }
  0xbb   :  { %v197_v39 = vadd.f32 %v196_v37, %v173_v36 }
  0xbd   :  { %v216_v60 = vpop.f32.mrf.mxu1 }
  0xbe   :  { %v217_v1 = vadd.f32 %v216_v60, %v174_v58 }
  0xc1   :  { %v312_v40 = vpop.f32.mrf.mxu3 }
  0xc2   :  { %v313_v42 = vadd.f32 %v312_v40, %v289_v38 }
  0xc4   :  { %v355_v44 = vadd.f32 %v313_v42, %v197_v39  ;;  %v494_v42 = vld [vmem:[%s829_s7] ss:$0 sm:$0xff] }
  0xc6   :  { %v480_v46 = vmul.f32 -1.442695, %v355_v44 }
  0xc8   :  { %495 = vpow2.f32 %v480_v46 }
  0xcb   :  { %v236_v23 = vpop.f32.mrf.mxu2 }
  0xcc   :  { %v237_v25 = vadd.f32 %v236_v23, %v175_v21 }
  0xce   :  { %v496_v51 = vpop.eup %495 }
  0xcf   :  { %v359_v52 = vadd.f32 1.0, %v496_v51 }
  0xd1   :  { %497 = vrcp.f32 %v359_v52  ;;  %vm365_vm0 = vweird.f32 %v359_v52  ;;  %v371_v11 = vand.u32 2147483648, %v359_v52  ;;  %v369_v13 = vand.u32 2147483647, %v359_v52 }
  0xd3   :  { %v372_v17 = vor.u32 1.1754944e-38, %v371_v11  ;;  %vm370_vm3 = vcmp.eq.f32.partialorder %v369_v13, 8.507059e+37 }
  0xd7   :  { %v498_v61 = vpop.eup %497 }
  0xd8   :  { %v361_v0 = vmul.f32 %v498_v61, %v359_v52  ;;  %vm366_vm1 = vweird.f32 %v498_v61 }
  0xd9   :  { %vm367_vm2 = vmor %vm365_vm0, %vm366_vm1 }
  0xda   :  { %v332_v3 = vpop.f32.mrf.mxu0  ;;  %v362_v6 = vsub.f32 1.0, %v361_v0 }
  0xdb   :  { %v333_v4 = vadd.f32 %v332_v3, %v290_v62 }
  0xdc   :  { %v363_v10 = vmul.f32 %v498_v61, %v362_v6 }
  0xdd   :  { %v375_v7 = vadd.f32 %v333_v4, %v217_v1  ;;  %v352_v16 = vpop.f32.mrf.mxu1 }
  0xde   :  { %v364_v12 = vadd.f32 %v498_v61, %v363_v10  ;;  %v353_v20 = vadd.f32 %v352_v16, %v291_v14 }
  0xdf   :  { %v481_v9 = vmul.f32 -1.442695, %v375_v7 }
  0xe0   :  { %v368_v19 = vsel %vm367_vm2, %v498_v61, %v364_v12 }
  0xe1   :  { %499 = vpow2.f32 %v481_v9  ;;  %v373_v22 = vsel %vm370_vm3, %v372_v17, %v368_v19 }
  0xe2   :  { %v395_v24 = vmul.f32 %v373_v22, %v353_v20 }
  0xe4   :  { %v396_v28 = vadd.f32 %v395_v24, %v237_v25 }
  0xe7   :  { %v500_v15 = vpop.eup %499 }
  0xe8   :  { %v379_v18 = vadd.f32 1.0, %v500_v15 }
  0xea   :  { %501 = vrcp.f32 %v379_v18  ;;  %v391_v30 = vand.u32 2147483648, %v379_v18  ;;  %v389_v32 = vand.u32 2147483647, %v379_v18  ;;  %vm385_vm5 = vweird.f32 %v379_v18 }
  0xeb   :  { %503 = vtanh.f32 %v396_v28 }
  0xec   :  { %v392_v35 = vor.u32 1.1754944e-38, %v391_v30  ;;  %vm390_vm7 = vcmp.eq.f32.partialorder %v389_v32, 8.507059e+37 }
  0xf0   :  { %v502_v26 = vpop.eup %501 }
  0xf1   :  { %v381_v27 = vmul.f32 %v502_v26, %v379_v18  ;;  %vm386_vm4 = vweird.f32 %v502_v26  ;;  %v504_v38 = vpop.eup %503 }
  0xf2   :  { %vm387_vm6 = vmor %vm385_vm5, %vm386_vm4 }
  0xf3   :  { %v382_v29 = vsub.f32 1.0, %v381_v27 }
  0xf5   :  { %v383_v31 = vmul.f32 %v502_v26, %v382_v29 }
  0xf7   :  { %v384_v33 = vadd.f32 %v502_v26, %v383_v31 }
  0xf9   :  { %v388_v36 = vsel %vm387_vm6, %v502_v26, %v384_v33 }
  0xfa   :  { %v393_v34 = vsel %vm390_vm7, %v392_v35, %v388_v36 }
  0xfb   :  { %v398_v37 = vsub.f32 1.0, %v393_v34  ;;  %v400_v40 = vmul.f32 %v393_v34, %v789_v54 }
  0xfd   :  { %v399_v39 = vmul.f32 %v504_v38, %v398_v37 }
  0xff   :  { %v401_v41 = vadd.f32 %v400_v40, %v399_v39 }
 0x101   :  { %439 = vmatmul.f32.vlgmr.msrb.gmra.mxu2 %v401_v41  ;;  %402 = vst [vmem:[#allocation14] sm:$0xff] %v401_v41 }
 0x102   :  { %465 = dma.vmem_to_hbm [thread:$0]  %s461_s18, 128, %s463_s21, [#allocation15]  }
 0x184   :  { %v440_v54 = vpop.f32.mrf.mxu2 }
 0x185   :  { %v441_v43 = vadd.f32 %v494_v42, %v440_v54 }
 0x187   :  { %443 = vst [vmem:[#allocation13] sm:$0xff] %v441_v43 }
 0x188   :  { %454 = dma.vmem_to_hbm [thread:$0]  %s450_s24, 128, %s452_s27, [#allocation4]  }
 0x189   :  { %705 = dma.done.wait [#allocation4], 128  }
 0x18a   :  { %706 = vsyncadd [#allocation4], 4294967168 }
 0x18b   :  { %707 = dma.done.wait [#allocation15], 128  }
 0x18c   :  { %708 = vsyncadd [#allocation15], 4294967168 }
 0x18d   :  { %474 = vsyncpa [#allocation3], 1 }
 0x18e   :  { %475 = vsyncpa [#allocation6], 1 }
 0x18f   :  { %476 = vsyncpa [#allocation9], 1 }
 0x190   :  { %477 = vsyncpa [#allocation12], 1 }
 0x191   :  { %478 = vsyncpa [#allocation4], 1 }
 0x192   :  { %479 = vsyncpa [#allocation15], 1 }

// kernel: tpu_custom_call.1
= control target key start
LH: loop header
LB: loop body
LE: loop exit
PB: predicated region body
PF: predicated region fallthrough
CT: control target
= control target key end

     0   :  { %15 = vsyncpa [#allocation3], 0  ;;  %s822_s0 = inlined_call_operand.hbm [shape: f32[8,128], index: 0, kind: input, shape index: {}]   ;;  %s823_s1 = inlined_call_operand.hbm [shape: f32[8,128], index: 1, kind: input, shape index: {}]   ;;  %s824_s2 = inlined_call_operand.hbm [shape: f32[128,384], index: 2, kind: input, shape index: {}]   ;;  %s825_s3 = inlined_call_operand.hbm [shape: f32[128,384], index: 3, kind: input, shape index: {}]   ;;  %s826_s4 = inlined_call_operand.vmem [shape: f32[1,384], index: 4, kind: input, shape index: {}]   ;;  %s827_s5 = inlined_call_operand.hbm [shape: f32[1,384], index: 5, kind: input, shape index: {}]   ;;  %s828_s6 = inlined_call_operand.hbm [shape: f32[128,128], index: 6, kind: input, shape index: {}]   ;;  %s829_s7 = inlined_call_operand.vmem [shape: f32[1,128], index: 7, kind: input, shape index: {}]   ;;  %s830_s8 = inlined_call_operand.hbm [shape: f32[8,128], index: 8, kind: output, shape index: {0}]   ;;  %s831_s9 = inlined_call_operand.hbm [shape: f32[8,128], index: 9, kind: output, shape index: {1}]  }
   0x1   :  { %16 = vsyncpa [#allocation6], 0 }
   0x2   :  { %17 = vsyncpa [#allocation9], 0 }
   0x3   :  { %18 = vsyncpa [#allocation12], 0 }
   0x4   :  { %19 = vsyncpa [#allocation4], 0  ;;  %s37_s11 = sshll.u32 %s823_s1, 4  ;;  %s38_s11 = int_to_ptr.hbm [resolvable:$true] %s37_s11 }
   0x5   :  { %20 = vsyncpa [#allocation15], 0  ;;  %s709_s12 = smov [#allocation5]   ;;  %s60_s16 = sshll.u32 %s825_s3, 4  ;;  %s61_s16 = int_to_ptr.hbm [resolvable:$true] %s60_s16 }
   0x6   :  { %s39_s13 = sshll.u32 %s709_s12, 4  ;;  %s710_s17 = smov [#allocation8]   ;;  %s40_s13 = int_to_ptr.vmem [resolvable:$true] %s39_s13 }
   0x7   :  { %42 = dma.hbm_to_vmem [thread:$0]  %s38_s11, 128, %s40_s13, [#allocation6]  }
   0x8   :  { %s62_s18 = sshll.u32 %s710_s17, 4  ;;  %s26_s21 = sshll.u32 %s822_s0, 4  ;;  %s63_s18 = int_to_ptr.vmem [resolvable:$true] %s62_s18  ;;  %s27_s21 = int_to_ptr.hbm [resolvable:$true] %s26_s21 }
   0x9   :  { %s711_s1 = smov 384   ;;  %s712_s22 = smov 24  }
   0xa   :  { %68 = dma.hbm_to_vmem [thread:$0]  %s61_s16, 6144, %s63_s18, [#allocation9], %s711_s1, %s711_s1, %s712_s22  }
   0xb   :  { %s47_s25 = sshll.u32 %s824_s2, 4  ;;  %s713_s26 = smov [#allocation2]   ;;  %s48_s25 = int_to_ptr.hbm [resolvable:$true] %s47_s25 }
   0xc   :  { %s28_s27 = sshll.u32 %s713_s26, 4  ;;  %s714_s3 = smov [#allocation7]   ;;  %s29_s27 = int_to_ptr.vmem [resolvable:$true] %s28_s27 }
   0xd   :  { %31 = dma.hbm_to_vmem [thread:$0]  %s27_s21, 128, %s29_s27, [#allocation3]  }
   0xe   :  { %s49_s28 = sshll.u32 %s714_s3, 4  ;;  %s76_s0 = sshll.u32 %s827_s5, 4  ;;  %s50_s28 = int_to_ptr.vmem [resolvable:$true] %s49_s28  ;;  %s77_s0 = int_to_ptr.hbm [resolvable:$true] %s76_s0 }
   0xf   :  { %55 = dma.hbm_to_vmem [thread:$0]  %s48_s25, 6144, %s50_s28, [#allocation6], %s711_s1, %s711_s1, %s712_s22  }
  0x10   :  { %s86_s12 = sshll.u32 %s828_s6, 4  ;;  %s715_s13 = smov [#allocation10]   ;;  %s87_s12 = int_to_ptr.hbm [resolvable:$true] %s86_s12 }
  0x11   :  { %s78_s2 = sshll.u32 %s715_s13, 4  ;;  %s716_s14 = smov [#allocation11]   ;;  %s79_s2 = int_to_ptr.vmem [resolvable:$true] %s78_s2 }
  0x12   :  { %81 = dma.hbm_to_vmem [thread:$0]  %s77_s0, 48, %s79_s2, [#allocation9]  }
  0x13   :  { %s88_s15 = sshll.u32 %s716_s14, 4  ;;  %s717_s16 = smov 128   ;;  %s89_s15 = int_to_ptr.vmem [resolvable:$true] %s88_s15 }
  0x14   :  { %s718_s17 = smov 8  }
  0x15   :  { %94 = dma.hbm_to_vmem [thread:$0]  %s87_s12, 2048, %s89_s15, [#allocation12], %s717_s16, %s717_s16, %s718_s17  }
  0x16   :  { %697 = dma.done.wait [#allocation3], 128  }
  0x17   :  { %698 = vsyncadd [#allocation3], 4294967168 }
  0x18   :  { %699 = dma.done.wait [#allocation6], 6272  }
  0x19   :  { %700 = vsyncadd [#allocation6], 4294961024 }
  0x1a   :  { %701 = dma.done.wait [#allocation9], 6192  }
  0x1b   :  { %702 = vsyncadd [#allocation9], 4294961104 }
  0x1c   :  { %703 = dma.done.wait [#allocation12], 2048  }
  0x1d   :  { %704 = vsyncadd [#allocation12], 4294965248  ;;  %v168_v0 = vld [vmem:[#allocation7 + $0x168] sm:$0xff]  ;;  %v165_v1 = vld [vmem:[#allocation7 + $0x150] sm:$0xff]  ;;  %s462_s21 = sshll.u32 %s831_s9, 4  ;;  %s720_s23 = smov [#allocation13]   ;;  %s463_s21 = int_to_ptr.hbm [resolvable:$true] %s462_s21 }
  0x1e   :  { %v284_v2 = vld [vmem:[#allocation8 + $0x168] sm:$0xff]  ;;  %179 = vmatpush.msra.mxu0 %v168_v0  ;;  %v281_v3 = vld [vmem:[#allocation8 + $0x150] sm:$0xff]  ;;  %v162_v4 = vld [vmem:[#allocation7 + $0x138] sm:$0xff]  ;;  %s449_s24 = sshll.u32 %s720_s23, 4  ;;  %s451_s27 = sshll.u32 %s830_s8, 4  ;;  %s450_s24 = int_to_ptr.vmem [resolvable:$true] %s449_s24  ;;  %s452_s27 = int_to_ptr.hbm [resolvable:$true] %s451_s27 }
  0x1f   :  { %295 = vmatpush.msra.mxu3 %v284_v2  ;;  %v278_v5 = vld [vmem:[#allocation8 + $0x138] sm:$0xff]  ;;  %v169_v6 = vld [vmem:[#allocation7 + $0x170] sm:$0xff]  ;;  %v159_v8 = vld [vmem:[#allocation7 + $0x120] sm:$0xff] }
  0x20   :  { %180 = vmatpush.msra.mxu0 %v165_v1  ;;  %v166_v7 = vld [vmem:[#allocation7 + $0x158] sm:$0xff]  ;;  %199 = vmatpush.msra.mxu1 %v169_v6  ;;  %v275_v9 = vld [vmem:[#allocation8 + $0x120] sm:$0xff]  ;;  %v156_v11 = vld [vmem:[#allocation7 + $0x108] sm:$0xff] }
  0x21   :  { %296 = vmatpush.msra.mxu3 %v281_v3  ;;  %v163_v10 = vld [vmem:[#allocation7 + $0x140] sm:$0xff]  ;;  %v272_v12 = vld [vmem:[#allocation8 + $0x108] sm:$0xff]  ;;  %v153_v14 = vld [vmem:[#allocation7 + $0xf0] sm:$0xff] }
  0x22   :  { %181 = vmatpush.msra.mxu0 %v162_v4  ;;  %200 = vmatpush.msra.mxu1 %v166_v7  ;;  %v160_v13 = vld [vmem:[#allocation7 + $0x128] sm:$0xff]  ;;  %v269_v15 = vld [vmem:[#allocation8 + $0xf0] sm:$0xff]  ;;  %v150_v17 = vld [vmem:[#allocation7 + $0xd8] sm:$0xff] }
  0x23   :  { %297 = vmatpush.msra.mxu3 %v278_v5  ;;  %v157_v16 = vld [vmem:[#allocation7 + $0x110] sm:$0xff]  ;;  %v266_v18 = vld [vmem:[#allocation8 + $0xd8] sm:$0xff]  ;;  %v147_v20 = vld [vmem:[#allocation7 + $0xc0] sm:$0xff] }
  0x24   :  { %182 = vmatpush.msra.mxu0 %v159_v8  ;;  %201 = vmatpush.msra.mxu1 %v163_v10  ;;  %v154_v19 = vld [vmem:[#allocation7 + $0xf8] sm:$0xff]  ;;  %v263_v21 = vld [vmem:[#allocation8 + $0xc0] sm:$0xff]  ;;  %v144_v23 = vld [vmem:[#allocation7 + $0xa8] sm:$0xff] }
  0x25   :  { %298 = vmatpush.msra.mxu3 %v275_v9  ;;  %v151_v22 = vld [vmem:[#allocation7 + $0xe0] sm:$0xff]  ;;  %v260_v24 = vld [vmem:[#allocation8 + $0xa8] sm:$0xff]  ;;  %v141_v26 = vld [vmem:[#allocation7 + $0x90] sm:$0xff] }
  0x26   :  { %183 = vmatpush.msra.mxu0 %v156_v11  ;;  %202 = vmatpush.msra.mxu1 %v160_v13  ;;  %v148_v25 = vld [vmem:[#allocation7 + $0xc8] sm:$0xff]  ;;  %v257_v27 = vld [vmem:[#allocation8 + $0x90] sm:$0xff]  ;;  %v170_v28 = vld [vmem:[#allocation7 + $0x178] sm:$0xff] }
  0x27   :  { %299 = vmatpush.msra.mxu3 %v272_v12  ;;  %v145_v29 = vld [vmem:[#allocation7 + $0xb0] sm:$0xff]  ;;  %v167_v30 = vld [vmem:[#allocation7 + $0x160] sm:$0xff]  ;;  %v138_v31 = vld [vmem:[#allocation7 + $0x78] sm:$0xff]  ;;  %219 = vmatpush.msra.mxu2 %v170_v28 }
  0x28   :  { %184 = vmatpush.msra.mxu0 %v153_v14  ;;  %203 = vmatpush.msra.mxu1 %v157_v16  ;;  %v254_v32 = vld [vmem:[#allocation8 + $0x78] sm:$0xff]  ;;  %v164_v34 = vld [vmem:[#allocation7 + $0x148] sm:$0xff]  ;;  %v135_v35 = vld [vmem:[#allocation7 + $0x60] sm:$0xff] }
  0x29   :  { %300 = vmatpush.msra.mxu3 %v269_v15  ;;  %v142_v33 = vld [vmem:[#allocation7 + $0x98] sm:$0xff]  ;;  %v251_v36 = vld [vmem:[#allocation8 + $0x60] sm:$0xff]  ;;  %220 = vmatpush.msra.mxu2 %v167_v30  ;;  %v161_v38 = vld [vmem:[#allocation7 + $0x130] sm:$0xff] }
  0x2a   :  { %185 = vmatpush.msra.mxu0 %v150_v17  ;;  %204 = vmatpush.msra.mxu1 %v154_v19  ;;  %v139_v37 = vld [vmem:[#allocation7 + $0x80] sm:$0xff]  ;;  %v132_v39 = vld [vmem:[#allocation7 + $0x48] sm:$0xff]  ;;  %v158_v42 = vld [vmem:[#allocation7 + $0x118] sm:$0xff] }
  0x2b   :  { %301 = vmatpush.msra.mxu3 %v266_v18  ;;  %v248_v40 = vld [vmem:[#allocation8 + $0x48] sm:$0xff]  ;;  %221 = vmatpush.msra.mxu2 %v164_v34  ;;  %v129_v43 = vld [vmem:[#allocation7 + $0x30] sm:$0xff]  ;;  %v155_v46 = vld [vmem:[#allocation7 + $0x100] sm:$0xff] }
  0x2c   :  { %186 = vmatpush.msra.mxu0 %v147_v20  ;;  %205 = vmatpush.msra.mxu1 %v151_v22  ;;  %v136_v41 = vld [vmem:[#allocation7 + $0x68] sm:$0xff]  ;;  %v245_v44 = vld [vmem:[#allocation8 + $0x30] sm:$0xff]  ;;  %v126_v47 = vld [vmem:[#allocation7 + $0x18] sm:$0xff] }
  0x2d   :  { %302 = vmatpush.msra.mxu3 %v263_v21  ;;  %222 = vmatpush.msra.mxu2 %v161_v38  ;;  %v133_v45 = vld [vmem:[#allocation7 + $0x50] sm:$0xff]  ;;  %v242_v48 = vld [vmem:[#allocation8 + $0x18] sm:$0xff]  ;;  %v152_v50 = vld [vmem:[#allocation7 + $0xe8] sm:$0xff] }
  0x2e   :  { %187 = vmatpush.msra.mxu0 %v144_v23  ;;  %206 = vmatpush.msra.mxu1 %v148_v25  ;;  %v130_v49 = vld [vmem:[#allocation7 + $0x38] sm:$0xff]  ;;  %v123_v51 = vld [vmem:[#allocation7] sm:$0xff]  ;;  %v285_v53 = vld [vmem:[#allocation8 + $0x170] sm:$0xff] }
  0x2f   :  { %303 = vmatpush.msra.mxu3 %v260_v24  ;;  %223 = vmatpush.msra.mxu2 %v158_v42  ;;  %v239_v52 = vld [vmem:[#allocation8] sm:$0xff]  ;;  %v789_v54 = vld [vmem:[#allocation5] sm:$0xff]  ;;  %v791_v56 = vld [vmem:[#allocation2] sm:$0xff] }
  0x30   :  { %188 = vmatpush.msra.mxu0 %v141_v26  ;;  %207 = vmatpush.msra.mxu1 %v145_v29  ;;  %v127_v55 = vld [vmem:[#allocation7 + $0x20] sm:$0xff]  ;;  %v282_v57 = vld [vmem:[#allocation8 + $0x158] sm:$0xff]  ;;  %v149_v58 = vld [vmem:[#allocation7 + $0xd0] sm:$0xff] }
  0x31   :  { %304 = vmatpush.msra.mxu3 %v257_v27  ;;  %224 = vmatpush.msra.mxu2 %v155_v46  ;;  %v124_v59 = vld [vmem:[#allocation7 + $0x8] sm:$0xff]  ;;  %v279_v60 = vld [vmem:[#allocation8 + $0x140] sm:$0xff]  ;;  %v286_v61 = vld [vmem:[#allocation8 + $0x178] sm:$0xff] }
  0x32   :  { %189 = vmatpush.msra.mxu0 %v138_v31  ;;  %208 = vmatpush.msra.mxu1 %v142_v33  ;;  %v146_v62 = vld [vmem:[#allocation7 + $0xb8] sm:$0xff]  ;;  %v276_v63 = vld [vmem:[#allocation8 + $0x128] sm:$0xff]  ;;  %v283_v0 = vld [vmem:[#allocation8 + $0x160] sm:$0xff] }
  0x33   :  { %305 = vmatpush.msra.mxu3 %v254_v32  ;;  %225 = vmatpush.msra.mxu2 %v152_v50  ;;  %v143_v1 = vld [vmem:[#allocation7 + $0xa0] sm:$0xff]  ;;  %v273_v2 = vld [vmem:[#allocation8 + $0x110] sm:$0xff]  ;;  %v280_v3 = vld [vmem:[#allocation8 + $0x148] sm:$0xff] }
  0x34   :  { %190 = vmatpush.msra.mxu0 %v135_v35  ;;  %209 = vmatpush.msra.mxu1 %v139_v37  ;;  %v140_v4 = vld [vmem:[#allocation7 + $0x88] sm:$0xff]  ;;  %v270_v5 = vld [vmem:[#allocation8 + $0xf8] sm:$0xff]  ;;  %v277_v6 = vld [vmem:[#allocation8 + $0x130] sm:$0xff] }
  0x35   :  { %306 = vmatpush.msra.mxu3 %v251_v36  ;;  %226 = vmatpush.msra.mxu2 %v149_v58  ;;  %v137_v7 = vld [vmem:[#allocation7 + $0x70] sm:$0xff]  ;;  %v267_v8 = vld [vmem:[#allocation8 + $0xe0] sm:$0xff]  ;;  %v274_v9 = vld [vmem:[#allocation8 + $0x118] sm:$0xff] }
  0x36   :  { %191 = vmatpush.msra.mxu0 %v132_v39  ;;  %210 = vmatpush.msra.mxu1 %v136_v41  ;;  %v134_v10 = vld [vmem:[#allocation7 + $0x58] sm:$0xff]  ;;  %v264_v11 = vld [vmem:[#allocation8 + $0xc8] sm:$0xff]  ;;  %v271_v12 = vld [vmem:[#allocation8 + $0x100] sm:$0xff] }
  0x37   :  { %307 = vmatpush.msra.mxu3 %v248_v40  ;;  %227 = vmatpush.msra.mxu2 %v146_v62  ;;  %v131_v13 = vld [vmem:[#allocation7 + $0x40] sm:$0xff]  ;;  %v261_v14 = vld [vmem:[#allocation8 + $0xb0] sm:$0xff]  ;;  %v268_v15 = vld [vmem:[#allocation8 + $0xe8] sm:$0xff] }
  0x38   :  { %192 = vmatpush.msra.mxu0 %v129_v43  ;;  %211 = vmatpush.msra.mxu1 %v133_v45  ;;  %v128_v16 = vld [vmem:[#allocation7 + $0x28] sm:$0xff]  ;;  %v258_v17 = vld [vmem:[#allocation8 + $0x98] sm:$0xff]  ;;  %v265_v18 = vld [vmem:[#allocation8 + $0xd0] sm:$0xff] }
  0x39   :  { %308 = vmatpush.msra.mxu3 %v245_v44  ;;  %228 = vmatpush.msra.mxu2 %v143_v1  ;;  %v125_v19 = vld [vmem:[#allocation7 + $0x10] sm:$0xff]  ;;  %v255_v20 = vld [vmem:[#allocation8 + $0x80] sm:$0xff]  ;;  %v262_v21 = vld [vmem:[#allocation8 + $0xb8] sm:$0xff] }
  0x3a   :  { %193 = vmatpush.msra.mxu0 %v126_v47  ;;  %212 = vmatpush.msra.mxu1 %v130_v49  ;;  %v252_v22 = vld [vmem:[#allocation8 + $0x68] sm:$0xff]  ;;  %v259_v23 = vld [vmem:[#allocation8 + $0xa0] sm:$0xff]  ;;  %v249_v24 = vld [vmem:[#allocation8 + $0x50] sm:$0xff] }
  0x3b   :  { %309 = vmatpush.msra.mxu3 %v242_v48  ;;  %229 = vmatpush.msra.mxu2 %v140_v4  ;;  %v256_v25 = vld [vmem:[#allocation8 + $0x88] sm:$0xff]  ;;  %v246_v26 = vld [vmem:[#allocation8 + $0x38] sm:$0xff]  ;;  %v253_v27 = vld [vmem:[#allocation8 + $0x70] sm:$0xff] }
  0x3c   :  { %194 = vmatpush.msra.mxu0 %v123_v51  ;;  %213 = vmatpush.msra.mxu1 %v127_v55  ;;  %v243_v28 = vld [vmem:[#allocation8 + $0x20] sm:$0xff]  ;;  %v250_v29 = vld [vmem:[#allocation8 + $0x58] sm:$0xff]  ;;  %v240_v30 = vld [vmem:[#allocation8 + $0x8] sm:$0xff] }
  0x3d   :  { %310 = vmatpush.msra.mxu3 %v239_v52  ;;  %195 = vmatmul.f32.vlgmr.msra.gmra.mxu0 %v791_v56  ;;  %v247_v31 = vld [vmem:[#allocation8 + $0x40] sm:$0xff]  ;;  %v244_v32 = vld [vmem:[#allocation8 + $0x28] sm:$0xff]  ;;  %v241_v33 = vld [vmem:[#allocation8 + $0x10] sm:$0xff] }
  0x3e   :  { %315 = vmatpush.msrb.mxu0 %v285_v53  ;;  %311 = vmatmul.f32.vlgmr.msra.gmra.mxu3 %v789_v54  ;;  %v802_v34 = vld [vmem:[%s826_s4] sm:$0x7]  ;;  %v804_v35 = vld [vmem:[#allocation10] sm:$0x7]  ;;  %v417_v43 = vld [vmem:[#allocation11 + $0x70] sm:$0xff]  ;;  %s719_s4 = smov [#allocation14]  }
  0x3f   :  { %214 = vmatpush.msra.mxu1 %v124_v59  ;;  %230 = vmatpush.msra.mxu2 %v137_v7  ;;  %v173_v36 = vperm.slane %v802_v34, 0  ;;  %v289_v38 = vperm.slane %v804_v35, 0  ;;  %v418_v41 = vld [vmem:[#allocation11 + $0x78] sm:$0xff]  ;;  %v416_v45 = vld [vmem:[#allocation11 + $0x68] sm:$0xff]  ;;  %v415_v47 = vld [vmem:[#allocation11 + $0x60] sm:$0xff]  ;;  %v174_v58 = vperm.slane %v802_v34, 1 }
  0x40   :  { %316 = vmatpush.msrb.mxu0 %v282_v57  ;;  %215 = vmatmul.f32.vlgmr.msra.gmra.mxu1 %v791_v56  ;;  %v414_v48 = vld [vmem:[#allocation11 + $0x58] sm:$0xff]  ;;  %v413_v49 = vld [vmem:[#allocation11 + $0x50] sm:$0xff]  ;;  %v412_v50 = vld [vmem:[#allocation11 + $0x48] sm:$0xff]  ;;  %v290_v62 = vperm.slane %v804_v35, 1  ;;  %s460_s18 = sshll.u32 %s719_s4, 4  ;;  %s461_s18 = int_to_ptr.vmem [resolvable:$true] %s460_s18 }
  0x41   :  { %335 = vmatpush.msrb.mxu1 %v286_v61  ;;  %231 = vmatpush.msra.mxu2 %v134_v10  ;;  %v411_v53 = vld [vmem:[#allocation11 + $0x40] sm:$0xff]  ;;  %v410_v55 = vld [vmem:[#allocation11 + $0x38] sm:$0xff]  ;;  %v408_v57 = vld [vmem:[#allocation11 + $0x28] sm:$0xff] }
  0x42   :  { %317 = vmatpush.msrb.mxu0 %v279_v60  ;;  %v407_v59 = vld [vmem:[#allocation11 + $0x20] sm:$0xff] }
  0x43   :  { %336 = vmatpush.msrb.mxu1 %v283_v0  ;;  %232 = vmatpush.msra.mxu2 %v131_v13 }
  0x44   :  { %318 = vmatpush.msrb.mxu0 %v276_v63  ;;  %v406_v63 = vld [vmem:[#allocation11 + $0x18] sm:$0xff] }
  0x45   :  { %337 = vmatpush.msrb.mxu1 %v280_v3  ;;  %233 = vmatpush.msra.mxu2 %v128_v16 }
  0x46   :  { %319 = vmatpush.msrb.mxu0 %v273_v2  ;;  %v405_v2 = vld [vmem:[#allocation11 + $0x10] sm:$0xff] }
  0x47   :  { %338 = vmatpush.msrb.mxu1 %v277_v6  ;;  %234 = vmatpush.msra.mxu2 %v125_v19 }
  0x48   :  { %320 = vmatpush.msrb.mxu0 %v270_v5  ;;  %235 = vmatmul.f32.vlgmr.msra.gmra.mxu2 %v791_v56  ;;  %v409_v56 = vld [vmem:[#allocation11 + $0x30] sm:$0xff]  ;;  %v404_v5 = vld [vmem:[#allocation11 + $0x8] sm:$0xff] }
  0x49   :  { %339 = vmatpush.msrb.mxu1 %v274_v9  ;;  %423 = vmatpush.msrb.mxu2 %v418_v41 }
  0x4a   :  { %321 = vmatpush.msrb.mxu0 %v267_v8  ;;  %v403_v8 = vld [vmem:[#allocation11] sm:$0xff] }
  0x4b   :  { %340 = vmatpush.msrb.mxu1 %v271_v12  ;;  %424 = vmatpush.msrb.mxu2 %v417_v43 }
  0x4c   :  { %322 = vmatpush.msrb.mxu0 %v264_v11 }
  0x4d   :  { %341 = vmatpush.msrb.mxu1 %v268_v15  ;;  %425 = vmatpush.msrb.mxu2 %v416_v45 }
  0x4e   :  { %323 = vmatpush.msrb.mxu0 %v261_v14  ;;  %v291_v14 = vperm.slane %v804_v35, 2 }
  0x4f   :  { %342 = vmatpush.msrb.mxu1 %v265_v18  ;;  %426 = vmatpush.msrb.mxu2 %v415_v47 }
  0x50   :  { %324 = vmatpush.msrb.mxu0 %v258_v17 }
  0x51   :  { %343 = vmatpush.msrb.mxu1 %v262_v21  ;;  %427 = vmatpush.msrb.mxu2 %v414_v48  ;;  %v175_v21 = vperm.slane %v802_v34, 2 }
  0x52   :  { %325 = vmatpush.msrb.mxu0 %v255_v20 }
  0x53   :  { %344 = vmatpush.msrb.mxu1 %v259_v23  ;;  %428 = vmatpush.msrb.mxu2 %v413_v49 }
  0x54   :  { %326 = vmatpush.msrb.mxu0 %v252_v22 }
  0x55   :  { %345 = vmatpush.msrb.mxu1 %v256_v25  ;;  %429 = vmatpush.msrb.mxu2 %v412_v50 }
  0x56   :  { %327 = vmatpush.msrb.mxu0 %v249_v24 }
  0x57   :  { %346 = vmatpush.msrb.mxu1 %v253_v27  ;;  %430 = vmatpush.msrb.mxu2 %v411_v53 }
  0x58   :  { %328 = vmatpush.msrb.mxu0 %v246_v26 }
  0x59   :  { %347 = vmatpush.msrb.mxu1 %v250_v29  ;;  %431 = vmatpush.msrb.mxu2 %v410_v55 }
  0x5a   :  { %329 = vmatpush.msrb.mxu0 %v243_v28 }
  0x5b   :  { %348 = vmatpush.msrb.mxu1 %v247_v31  ;;  %432 = vmatpush.msrb.mxu2 %v409_v56 }
  0x5c   :  { %330 = vmatpush.msrb.mxu0 %v240_v30 }
  0x5d   :  { %331 = vmatmul.f32.vlgmr.msrb.gmra.mxu0 %v789_v54  ;;  %349 = vmatpush.msrb.mxu1 %v244_v32 }
  0x5e   :  { %433 = vmatpush.msrb.mxu2 %v408_v57 }
  0x5f   :  { %350 = vmatpush.msrb.mxu1 %v241_v33 }
  0x60   :  { %351 = vmatmul.f32.vlgmr.msrb.gmra.mxu1 %v789_v54  ;;  %434 = vmatpush.msrb.mxu2 %v407_v59 }
  0x62   :  { %435 = vmatpush.msrb.mxu2 %v406_v63 }
  0x64   :  { %436 = vmatpush.msrb.mxu2 %v405_v2 }
  0x66   :  { %437 = vmatpush.msrb.mxu2 %v404_v5 }
  0x68   :  { %438 = vmatpush.msrb.mxu2 %v403_v8 }
  0xba   :  { %v196_v37 = vpop.f32.mrf.mxu0 }
  0xbb   :  { %v197_v39 = vadd.f32 %v196_v37, %v173_v36 }
  0xbd   :  { %v216_v60 = vpop.f32.mrf.mxu1 }
  0xbe   :  { %v217_v1 = vadd.f32 %v216_v60, %v174_v58 }
  0xc1   :  { %v312_v40 = vpop.f32.mrf.mxu3 }
  0xc2   :  { %v313_v42 = vadd.f32 %v312_v40, %v289_v38 }
  0xc4   :  { %v355_v44 = vadd.f32 %v313_v42, %v197_v39  ;;  %v494_v42 = vld [vmem:[%s829_s7] ss:$0 sm:$0xff] }
  0xc6   :  { %v480_v46 = vmul.f32 -1.442695, %v355_v44 }
  0xc8   :  { %495 = vpow2.f32 %v480_v46 }
  0xcb   :  { %v236_v23 = vpop.f32.mrf.mxu2 }
  0xcc   :  { %v237_v25 = vadd.f32 %v236_v23, %v175_v21 }
  0xce   :  { %v496_v51 = vpop.eup %495 }
  0xcf   :  { %v359_v52 = vadd.f32 1.0, %v496_v51 }
  0xd1   :  { %497 = vrcp.f32 %v359_v52  ;;  %vm365_vm0 = vweird.f32 %v359_v52  ;;  %v371_v11 = vand.u32 2147483648, %v359_v52  ;;  %v369_v13 = vand.u32 2147483647, %v359_v52 }
  0xd3   :  { %v372_v17 = vor.u32 1.1754944e-38, %v371_v11  ;;  %vm370_vm3 = vcmp.eq.f32.partialorder %v369_v13, 8.507059e+37 }
  0xd7   :  { %v498_v61 = vpop.eup %497 }
  0xd8   :  { %v361_v0 = vmul.f32 %v498_v61, %v359_v52  ;;  %vm366_vm1 = vweird.f32 %v498_v61 }
  0xd9   :  { %vm367_vm2 = vmor %vm365_vm0, %vm366_vm1 }
  0xda   :  { %v332_v3 = vpop.f32.mrf.mxu0  ;;  %v362_v6 = vsub.f32 1.0, %v361_v0 }
  0xdb   :  { %v333_v4 = vadd.f32 %v332_v3, %v290_v62 }
  0xdc   :  { %v363_v10 = vmul.f32 %v498_v61, %v362_v6 }
  0xdd   :  { %v375_v7 = vadd.f32 %v333_v4, %v217_v1  ;;  %v352_v16 = vpop.f32.mrf.mxu1 }
  0xde   :  { %v364_v12 = vadd.f32 %v498_v61, %v363_v10  ;;  %v353_v20 = vadd.f32 %v352_v16, %v291_v14 }
  0xdf   :  { %v481_v9 = vmul.f32 -1.442695, %v375_v7 }
  0xe0   :  { %v368_v19 = vsel %vm367_vm2, %v498_v61, %v364_v12 }
  0xe1   :  { %499 = vpow2.f32 %v481_v9  ;;  %v373_v22 = vsel %vm370_vm3, %v372_v17, %v368_v19 }
  0xe2   :  { %v395_v24 = vmul.f32 %v373_v22, %v353_v20 }
  0xe4   :  { %v396_v28 = vadd.f32 %v395_v24, %v237_v25 }
  0xe7   :  { %v500_v15 = vpop.eup %499 }
  0xe8   :  { %v379_v18 = vadd.f32 1.0, %v500_v15 }
  0xea   :  { %501 = vrcp.f32 %v379_v18  ;;  %v391_v30 = vand.u32 2147483648, %v379_v18  ;;  %v389_v32 = vand.u32 2147483647, %v379_v18  ;;  %vm385_vm5 = vweird.f32 %v379_v18 }
  0xeb   :  { %503 = vtanh.f32 %v396_v28 }
  0xec   :  { %v392_v35 = vor.u32 1.1754944e-38, %v391_v30  ;;  %vm390_vm7 = vcmp.eq.f32.partialorder %v389_v32, 8.507059e+37 }
  0xf0   :  { %v502_v26 = vpop.eup %501 }
  0xf1   :  { %v381_v27 = vmul.f32 %v502_v26, %v379_v18  ;;  %vm386_vm4 = vweird.f32 %v502_v26  ;;  %v504_v38 = vpop.eup %503 }
  0xf2   :  { %vm387_vm6 = vmor %vm385_vm5, %vm386_vm4 }
  0xf3   :  { %v382_v29 = vsub.f32 1.0, %v381_v27 }
  0xf5   :  { %v383_v31 = vmul.f32 %v502_v26, %v382_v29 }
  0xf7   :  { %v384_v33 = vadd.f32 %v502_v26, %v383_v31 }
  0xf9   :  { %v388_v36 = vsel %vm387_vm6, %v502_v26, %v384_v33 }
  0xfa   :  { %v393_v34 = vsel %vm390_vm7, %v392_v35, %v388_v36 }
  0xfb   :  { %v398_v37 = vsub.f32 1.0, %v393_v34  ;;  %v400_v40 = vmul.f32 %v393_v34, %v789_v54 }
  0xfd   :  { %v399_v39 = vmul.f32 %v504_v38, %v398_v37 }
  0xff   :  { %v401_v41 = vadd.f32 %v400_v40, %v399_v39 }
 0x101   :  { %439 = vmatmul.f32.vlgmr.msrb.gmra.mxu2 %v401_v41  ;;  %402 = vst [vmem:[#allocation14] sm:$0xff] %v401_v41 }
 0x102   :  { %465 = dma.vmem_to_hbm [thread:$0]  %s461_s18, 128, %s463_s21, [#allocation15]  }
 0x184   :  { %v440_v54 = vpop.f32.mrf.mxu2 }
 0x185   :  { %v441_v43 = vadd.f32 %v494_v42, %v440_v54 }
 0x187   :  { %443 = vst [vmem:[#allocation13] sm:$0xff] %v441_v43 }
 0x188   :  { %454 = dma.vmem_to_hbm [thread:$0]  %s450_s24, 128, %s452_s27, [#allocation4]  }
 0x189   :  { %705 = dma.done.wait [#allocation4], 128  }
 0x18a   :  { %706 = vsyncadd [#allocation4], 4294967168 }
 0x18b   :  { %707 = dma.done.wait [#allocation15], 128  }
 0x18c   :  { %708 = vsyncadd [#allocation15], 4294967168 }
 0x18d   :  { %474 = vsyncpa [#allocation3], 1 }
 0x18e   :  { %475 = vsyncpa [#allocation6], 1 }
 0x18f   :  { %476 = vsyncpa [#allocation9], 1 }
 0x190   :  { %477 = vsyncpa [#allocation12], 1 }
 0x191   :  { %478 = vsyncpa [#allocation4], 1 }
 0x192   :  { %479 = vsyncpa [#allocation15], 1 }

</bundles_post_ra>
